<compile_context>
chip_gen: v5e
topology: v5e:2x2
jax: 0.10.0
libtpu: 0.0.40
codegen_flags: <defaults>
</compile_context>

<pallas_src>
import math

import jax
import jax.numpy as jnp
from jax.experimental import pallas as pl
from jax.experimental.pallas import tpu as pltpu

VMEM_LIMIT = 32 * 1024 * 1024


# ------------------- Conv2d (im2col) + folded eval-BN/bias + ReLU -------------------
def _conv_kernel(x_ref, w_ref, scale_ref, shift_ref, o_ref):
    # x_ref:  (1, M, K)  im2col rows for one batch element (bf16)
    # w_ref:  (K, Cout)  (bf16);  scale/shift: (1, Cout) f32
    acc = jnp.dot(x_ref[0], w_ref[...], preferred_element_type=jnp.float32)
    out = jnp.maximum(acc * scale_ref[...] + shift_ref[...], 0.0)
    o_ref[0] = out.astype(o_ref.dtype)


def _im2col(x, k, pad):
    # x: (N, H, W, Cin) -> (N, Ho*Wo, k*k*Cin). Pure slicing/concat glue (layout plumbing);
    # the contraction itself runs on the MXU inside the Pallas kernel.
    N, H, W, Cin = x.shape
    xp = jnp.pad(x, ((0, 0), (pad, pad), (pad, pad), (0, 0)))
    Hp, Wp = H + 2 * pad, W + 2 * pad
    Ho, Wo = Hp - k + 1, Wp - k + 1
    cols = [xp[:, kh:kh + Ho, kw:kw + Wo, :] for kh in range(k) for kw in range(k)]
    xcol = jnp.concatenate(cols, axis=-1).reshape(N, Ho * Wo, k * k * Cin)
    return xcol, Ho, Wo


def conv2d_bn_relu(x, cp, k, pad):
    N = x.shape[0]
    xcol, Ho, Wo = _im2col(x, k, pad)
    M, K = xcol.shape[1], xcol.shape[2]
    Cout = cp['w'].shape[1]
    out = pl.pallas_call(
        _conv_kernel,
        out_shape=jax.ShapeDtypeStruct((N, M, Cout), jnp.bfloat16),
        grid=(N,),
        in_specs=[
            pl.BlockSpec((1, M, K), lambda n: (n, 0, 0)),
            pl.BlockSpec((K, Cout), lambda n: (0, 0)),
            pl.BlockSpec((1, Cout), lambda n: (0, 0)),
            pl.BlockSpec((1, Cout), lambda n: (0, 0)),
        ],
        out_specs=pl.BlockSpec((1, M, Cout), lambda n: (n, 0, 0)),
        compiler_params=pltpu.CompilerParams(
            dimension_semantics=("parallel",),
            vmem_limit_bytes=VMEM_LIMIT),
    )(xcol, cp['w'], cp['scale'], cp['shift'])
    return out.reshape(N, Ho, Wo, Cout)


# ---------------------------- MaxPool2d (2x2 windows) ------------------------------
def _pool_s2_kernel(x_ref, o_ref):
    # x_ref: (1, Ho, 2, Wo, 2*C) -- W pairs folded into lanes; o_ref: (1, Ho, Wo, C)
    C = o_ref.shape[3]
    m = jnp.maximum(x_ref[0, :, 0, :, :], x_ref[0, :, 1, :, :])     # rows max, (Ho, Wo, 2C)
    o_ref[0] = jnp.maximum(m[:, :, :C], m[:, :, C:])                # even/odd W max


def _pool_s1_kernel(x_ref, o_ref):
    # x_ref: (1, Ho, 2, Wp, C)  (-inf padded in W); o_ref: (1, Ho, Wo, C), Wo = Wp - 1
    Wo = o_ref.shape[2]
    r = jnp.maximum(x_ref[0, :, 0, :, :], x_ref[0, :, 1, :, :])     # (Ho, Wp, C)
    o_ref[0] = jnp.maximum(r[:, :Wo, :], r[:, 1:, :])


def max_pool_2x2(x, stride_w, pad_w):
    """MaxPool2d(kernel=(2,2), stride=(2, stride_w), padding=(0, pad_w)), pooled output
    written directly from the kernel (no dense window-max round trip)."""
    N, H, W, C = x.shape
    Ho = H // 2
    if stride_w == 2:
        Wo = W // 2
        xr = x.reshape(N, Ho, 2, Wo, 2 * C)         # free reshape: H->(Ho,2), (W,C)->(Wo,2C)
        kernel, in_block = _pool_s2_kernel, (1, Ho, 2, Wo, 2 * C)
    else:
        xr = jnp.pad(x, ((0, 0), (0, 0), (pad_w, pad_w), (0, 0)),
                     constant_values=-jnp.inf)
        Wp = W + 2 * pad_w
        Wo = Wp - 1
        xr = xr.reshape(N, Ho, 2, Wp, C)
        kernel, in_block = _pool_s1_kernel, (1, Ho, 2, Wp, C)
    return pl.pallas_call(
        kernel,
        out_shape=jax.ShapeDtypeStruct((N, Ho, Wo, C), x.dtype),
        grid=(N,),
        in_specs=[pl.BlockSpec(in_block, lambda n: (n, 0, 0, 0, 0))],
        out_specs=pl.BlockSpec((1, Ho, Wo, C), lambda n: (n, 0, 0, 0)),
        compiler_params=pltpu.CompilerParams(
            dimension_semantics=("parallel",),
            vmem_limit_bytes=VMEM_LIMIT),
    )(xr)


# ------------------------------ small matmul kernels --------------------------------
def _matmul_bias_kernel(x_ref, w_ref, b_ref, o_ref):
    o_ref[...] = (jnp.dot(x_ref[...].astype(jnp.bfloat16), w_ref[...],
                          preferred_element_type=jnp.float32) + b_ref[...])


def matmul_bias(x, w, b):
    M, nOut = x.shape[0], w.shape[1]
    return pl.pallas_call(
        _matmul_bias_kernel,
        out_shape=jax.ShapeDtypeStruct((M, nOut), jnp.float32),
        compiler_params=pltpu.CompilerParams(vmem_limit_bytes=VMEM_LIMIT),
    )(x, w, b)


def _dual_linear_kernel(xf_ref, xb_ref, wf_ref, wb_ref, b_ref, o_ref):
    # Fused concat([xf, xb]) @ [Wf; Wb] + b  -> two matmuls, no HBM concat.
    o_ref[...] = (jnp.dot(xf_ref[...].astype(jnp.bfloat16), wf_ref[...],
                          preferred_element_type=jnp.float32)
                  + jnp.dot(xb_ref[...].astype(jnp.bfloat16), wb_ref[...],
                            preferred_element_type=jnp.float32)
                  + b_ref[...])


def dual_linear(xf, xb, wf, wb, b):
    M, nOut = xf.shape[0], wf.shape[1]
    return pl.pallas_call(
        _dual_linear_kernel,
        out_shape=jax.ShapeDtypeStruct((M, nOut), jnp.float32),
        compiler_params=pltpu.CompilerParams(vmem_limit_bytes=VMEM_LIMIT),
    )(xf, xb, wf, wb, b)


# ------------------------ fused bidirectional LSTM recurrence ------------------------
def _bilstm_kernel(gxf_ref, gxb_ref, whf_ref, whb_ref, of_ref, ob_ref,
                   hf, cf, hb, cb):
    # gx*_ref: (1, B, 4H) precomputed x@W_ih + b for this step (fwd at t, bwd at T-1-t).
    # wh*_ref: (H, 4H) recurrent weights (bf16). Outputs written to their true time slots.
    t = pl.program_id(0)

    @pl.when(t == 0)
    def _():
        hf[...] = jnp.zeros_like(hf)
        cf[...] = jnp.zeros_like(cf)
        hb[...] = jnp.zeros_like(hb)
        cb[...] = jnp.zeros_like(cb)

    H = of_ref.shape[2]

    def step(gx, w_ref, h_scr, c_scr, o_ref):
        gates = gx + jnp.dot(h_scr[...].astype(jnp.bfloat16), w_ref[...],
                             preferred_element_type=jnp.float32)
        i = jax.nn.sigmoid(gates[:, 0:H])            # PyTorch gate order: i, f, g, o
        f = jax.nn.sigmoid(gates[:, H:2 * H])
        g = jnp.tanh(gates[:, 2 * H:3 * H])
        o = jax.nn.sigmoid(gates[:, 3 * H:4 * H])
        c = f * c_scr[...] + i * g
        h = o * jnp.tanh(c)
        c_scr[...] = c
        h_scr[...] = h
        o_ref[0] = h

    step(gxf_ref[0], whf_ref, hf, cf, of_ref)
    step(gxb_ref[0], whb_ref, hb, cb, ob_ref)


def bidirectional_lstm(x_seq, p):
    T, B, nIn = x_seq.shape
    H = p['hidden']
    # 1) hoisted input projection for BOTH directions in one (T*B, nIn) x (nIn, 8H) matmul
    gx = matmul_bias(x_seq.reshape(T * B, nIn), p['w_ih_cat'], p['b_cat'])
    gx = gx.reshape(T, B, 8 * H)
    gx_f = gx[:, :, :4 * H]
    gx_b = gx[:, :, 4 * H:]
    # 2) fused fwd + bwd recurrence; time reversal handled via index_map (no [::-1] copies)
    out_f, out_b = pl.pallas_call(
        _bilstm_kernel,
        out_shape=(jax.ShapeDtypeStruct((T, B, H), jnp.float32),
                   jax.ShapeDtypeStruct((T, B, H), jnp.float32)),
        grid=(T,),
        in_specs=[
            pl.BlockSpec((1, B, 4 * H), lambda t: (t, 0, 0)),
            pl.BlockSpec((1, B, 4 * H), lambda t: (T - 1 - t, 0, 0)),
            pl.BlockSpec((H, 4 * H), lambda t: (0, 0)),
            pl.BlockSpec((H, 4 * H), lambda t: (0, 0)),
        ],
        out_specs=(pl.BlockSpec((1, B, H), lambda t: (t, 0, 0)),
                   pl.BlockSpec((1, B, H), lambda t: (T - 1 - t, 0, 0))),
        scratch_shapes=[pltpu.VMEM((B, H), jnp.float32) for _ in range(4)],
        compiler_params=pltpu.CompilerParams(
            dimension_semantics=("arbitrary",),
            vmem_limit_bytes=VMEM_LIMIT),
    )(gx_f, gx_b, p['w_hh_f'], p['w_hh_b'])
    # 3) embedding Linear fused over [fwd | bwd] without concat; head padded to 128 lanes
    emb = dual_linear(out_f.reshape(T * B, H), out_b.reshape(T * B, H),
                      p['emb_wf'], p['emb_wb'], p['emb_b'])
    return emb[:, :p['emb_nout']].reshape(T, B, p['emb_nout'])


# ------------------------------- parameter setup -----------------------------------
def init_params(key, nc=1, nclass=37, nh=256):
    ks = [3, 3, 3, 3, 3, 3, 2]
    nm = [64, 128, 256, 256, 512, 512, 512]
    bn = [False, False, True, False, True, False, True]
    eps = 1e-5
    # Eval-mode BatchNorm with fresh running stats (mean=0, var=1, gamma=1, beta=0).
    bn_scale = 1.0 / math.sqrt(1.0 + eps)
    keys = iter(jax.random.split(key, 64))
    convs = []
    cin = nc
    for layer in range(7):
        cout, k = nm[layer], ks[layer]
        std = 1.0 / math.sqrt(k * k * cin)
        w = jax.random.normal(next(keys), (k, k, cin, cout), jnp.float32) * std
        b = jax.random.normal(next(keys), (cout,), jnp.float32) * 0.01
        if bn[layer]:
            scale = jnp.full((1, cout), bn_scale, jnp.float32)
            shift = (b * bn_scale).reshape(1, cout)
        else:
            scale = jnp.ones((1, cout), jnp.float32)
            shift = b.reshape(1, cout)
        convs.append({'w': w.reshape(k * k * cin, cout).astype(jnp.bfloat16),
                      'scale': scale, 'shift': shift})
        cin = cout

    def lstm_params(k, nIn, H, nOut):
        kk = iter(jax.random.split(k, 16))
        s = 1.0 / math.sqrt(H)
        u = lambda shape: jax.random.uniform(next(kk), shape, jnp.float32, -s, s)
        raw = {}
        for d in ('f', 'b'):
            raw[f'w_ih_{d}'] = u((4 * H, nIn))
            raw[f'w_hh_{d}'] = u((4 * H, H))
            raw[f'b_ih_{d}'] = u((4 * H,))
            raw[f'b_hh_{d}'] = u((4 * H,))
        se = 1.0 / math.sqrt(2 * H)
        emb_w = jax.random.uniform(next(kk), (nOut, 2 * H), jnp.float32, -se, se)
        emb_b = jax.random.uniform(next(kk), (nOut,), jnp.float32, -se, se)
        npad = ((nOut + 127) // 128) * 128           # lane-dense head output
        return {
            'hidden': H,
            'emb_nout': nOut,
            'w_ih_cat': jnp.concatenate([raw['w_ih_f'].T, raw['w_ih_b'].T],
                                        axis=1).astype(jnp.bfloat16),      # (nIn, 8H)
            'b_cat': jnp.concatenate([raw['b_ih_f'] + raw['b_hh_f'],
                                      raw['b_ih_b'] + raw['b_hh_b']]).reshape(1, 8 * H),
            'w_hh_f': raw['w_hh_f'].T.astype(jnp.bfloat16),                 # (H, 4H)
            'w_hh_b': raw['w_hh_b'].T.astype(jnp.bfloat16),
            'emb_wf': jnp.pad(emb_w[:, :H].T, ((0, 0), (0, npad - nOut))).astype(jnp.bfloat16),
            'emb_wb': jnp.pad(emb_w[:, H:].T, ((0, 0), (0, npad - nOut))).astype(jnp.bfloat16),
            'emb_b': jnp.pad(emb_b, (0, npad - nOut)).reshape(1, npad),
        }

    rnn1 = lstm_params(next(keys), 512, nh, nh)
    rnn2 = lstm_params(next(keys), nh, nh, nclass)
    return {'convs': convs, 'rnn1': rnn1, 'rnn2': rnn2}


# ---------------------------------- forward ----------------------------------------
def crnn_forward(x_nchw, params):
    # bf16 activations through the CNN (matmul operands); accumulation/epilogue in f32.
    x = jnp.transpose(x_nchw, (0, 2, 3, 1)).astype(jnp.bfloat16)     # NCHW -> NHWC
    ks = [3, 3, 3, 3, 3, 3, 2]
    pads = [1, 1, 1, 1, 1, 1, 0]
    pools_after = {0: (2, 0), 1: (2, 0), 3: (1, 1), 5: (1, 1)}       # conv idx -> (stride_w, pad_w)
    # TODO(synk): pool could be fused into the conv epilogue to save 4 launches/round trips.
    for layer in range(7):
        x = conv2d_bn_relu(x, params['convs'][layer], ks[layer], pads[layer])
        if layer in pools_after:
            sw, pw = pools_after[layer]
            x = max_pool_2x2(x, sw, pw)
    assert x.shape[1] == 1, 'the height of conv must be 1'
    seq = jnp.transpose(x[:, 0, :, :], (1, 0, 2))                    # (T, B, 512)
    # TODO(synk): PyTorch computes the embedding Linear in float64 (.double()); TPU Pallas
    # has no f64, so it is computed in f32 (bf16 matmul operands, f32 accumulate).
    seq = bidirectional_lstm(seq, params['rnn1'])                    # (T, B, nh)
    seq = bidirectional_lstm(seq, params['rnn2'])                    # (T, B, nclass)
    return seq


if __name__ == "__main__":
    key = jax.random.PRNGKey(0)
    k_x, k_p = jax.random.split(key)
    # PyTorch-style NCHW input, imgH must be a multiple of 16 (32 -> conv height 1).
    x = jax.random.normal(k_x, (2, 1, 32, 32), jnp.float32)
    params = init_params(k_p)
    out = crnn_forward(x, params)
    out = jax.block_until_ready(out)
    assert out.shape == (9, 2, 37), out.shape
    assert bool(jnp.isfinite(out).all())
    print("KERNEL_OK")
</pallas_src>

<mosaic_0001>
module attributes {stable_mosaic.version = 11 : i64} {
  func.func @_conv_kernel(%arg0: i32, %arg1: memref<1x1024x9xbf16, #tpu.memory_space<vmem>>, %arg2: memref<9x64xbf16, #tpu.memory_space<vmem>>, %arg3: memref<1x64xf32, #tpu.memory_space<vmem>>, %arg4: memref<1x64xf32, #tpu.memory_space<vmem>>, %arg5: memref<1x1024x64xbf16, #tpu.memory_space<vmem>>) attributes {dimension_semantics = [#tpu.dimension_semantics<parallel>], iteration_bounds = array<i64: 2>, scalar_prefetch = 0 : i64, scratch_operands = 0 : i64, tpu.core_type = #tpu.core_type<tc>, window_params = [{transform_indices = @transform_0, window_bounds = array<i64: 1, 1024, 9>}, {pipeline_mode = #tpu.pipeline_mode<synchronous>, transform_indices = @transform_1, window_bounds = array<i64: 9, 64>}, {pipeline_mode = #tpu.pipeline_mode<synchronous>, transform_indices = @transform_2, window_bounds = array<i64: 1, 64>}, {pipeline_mode = #tpu.pipeline_mode<synchronous>, transform_indices = @transform_3, window_bounds = array<i64: 1, 64>}, {transform_indices = @transform_4, window_bounds = array<i64: 1, 1024, 64>}]} {
    %c0 = arith.constant 0 : index
    %c0_0 = arith.constant 0 : index
    %c0_1 = arith.constant 0 : index
    %0 = vector.load %arg1[%c0, %c0_0, %c0_1] : memref<1x1024x9xbf16, #tpu.memory_space<vmem>>, vector<1x1024x9xbf16>
    %1 = vector.shape_cast %0 : vector<1x1024x9xbf16> to vector<1024x9xbf16>
    %c0_2 = arith.constant 0 : index
    %c0_3 = arith.constant 0 : index
    %2 = vector.load %arg2[%c0_2, %c0_3] : memref<9x64xbf16, #tpu.memory_space<vmem>>, vector<9x64xbf16>
    %cst = arith.constant dense<0.000000e+00> : vector<1024x64xf32>
    %3 = tpu.matmul %1, %2, %cst {dimension_numbers = #tpu.dot_dimension_numbers<[1], [0], [0], [1], [0, 0, 1, 1], [], []>} : vector<1024x9xbf16>, vector<9x64xbf16>, vector<1024x64xf32> -> vector<1024x64xf32>
    %c0_4 = arith.constant 0 : index
    %c0_5 = arith.constant 0 : index
    %4 = vector.load %arg3[%c0_4, %c0_5] : memref<1x64xf32, #tpu.memory_space<vmem>>, vector<1x64xf32>
    %5 = vector.broadcast %4 : vector<1x64xf32> to vector<1024x64xf32>
    %6 = arith.mulf %3, %5 : vector<1024x64xf32>
    %c0_6 = arith.constant 0 : index
    %c0_7 = arith.constant 0 : index
    %7 = vector.load %arg4[%c0_6, %c0_7] : memref<1x64xf32, #tpu.memory_space<vmem>>, vector<1x64xf32>
    %8 = vector.broadcast %7 : vector<1x64xf32> to vector<1024x64xf32>
    %9 = arith.addf %6, %8 : vector<1024x64xf32>
    %cst_8 = arith.constant 0.000000e+00 : f32
    %10 = vector.broadcast %cst_8 : f32 to vector<1024x64xf32>
    %11 = arith.maximumf %9, %10 : vector<1024x64xf32>
    %12 = arith.truncf %11 : vector<1024x64xf32> to vector<1024x64xbf16>
    %c0_9 = arith.constant 0 : index
    %c0_10 = arith.constant 0 : index
    %c0_11 = arith.constant 0 : index
    %13 = vector.load %arg5[%c0_9, %c0_10, %c0_11] : memref<1x1024x64xbf16, #tpu.memory_space<vmem>>, vector<1x1024x64xbf16>
    %14 = vector.shape_cast %13 : vector<1x1024x64xbf16> to vector<1024x64xbf16>
    %15 = vector.shape_cast %12 : vector<1024x64xbf16> to vector<1x1024x64xbf16>
    tpu.vector_store %arg5[%c0_9, %c0_10, %c0_11], %15 {strides = array<i32>} : memref<1x1024x64xbf16, #tpu.memory_space<vmem>>, vector<1x1024x64xbf16>,
    return
  }
  func.func @transform_0(%arg0: i32) -> (i32, i32, i32) {
    %c0_i32 = arith.constant 0 : i32
    %c0_i32_0 = arith.constant 0 : i32
    %c0_i32_1 = arith.constant 0 : i32
    return %arg0, %c0_i32, %c0_i32_0 : i32, i32, i32
  }
  func.func @transform_1(%arg0: i32) -> (i32, i32) {
    %c0_i32 = arith.constant 0 : i32
    %c0_i32_0 = arith.constant 0 : i32
    %c0_i32_1 = arith.constant 0 : i32
    return %c0_i32, %c0_i32_0 : i32, i32
  }
  func.func @transform_2(%arg0: i32) -> (i32, i32) {
    %c0_i32 = arith.constant 0 : i32
    %c0_i32_0 = arith.constant 0 : i32
    %c0_i32_1 = arith.constant 0 : i32
    return %c0_i32, %c0_i32_0 : i32, i32
  }
  func.func @transform_3(%arg0: i32) -> (i32, i32) {
    %c0_i32 = arith.constant 0 : i32
    %c0_i32_0 = arith.constant 0 : i32
    %c0_i32_1 = arith.constant 0 : i32
    return %c0_i32, %c0_i32_0 : i32, i32
  }
  func.func @transform_4(%arg0: i32) -> (i32, i32, i32) {
    %c0_i32 = arith.constant 0 : i32
    %c0_i32_0 = arith.constant 0 : i32
    %c0_i32_1 = arith.constant 0 : i32
    return %arg0, %c0_i32, %c0_i32_0 : i32, i32, i32
  }
}

</mosaic_0001>

<bundles_post_ra>
// kernel: tpu_custom_call.1
= control target key start
LH: loop header
LB: loop body
LE: loop exit
PB: predicated region body
PF: predicated region fallthrough
CT: control target
= control target key end

     0   :  { %s2339_s15 = smov 0   ;;  %s3033_s0 = inlined_call_operand.vmem [shape: bf16[2,1024,9], index: 0, kind: input, shape index: {}]   ;;  %s3034_s1 = inlined_call_operand.vmem [shape: bf16[9,64], index: 1, kind: input, shape index: {}]   ;;  %s3035_s2 = inlined_call_operand.vmem [shape: f32[1,64], index: 2, kind: input, shape index: {}]   ;;  %s3036_s3 = inlined_call_operand.vmem [shape: f32[1,64], index: 3, kind: input, shape index: {}]   ;;  %s3037_s4 = inlined_call_operand.vmem [shape: bf16[2,1024,64], index: 4, kind: output, shape index: {}]  }
   0x1 LB: > { %s1887_s16 = sadd.s32 4294967295, %s2311_s15   ;;  %p1891_p0 = scmp.ge.s32.totalorder %s2311_s15, 1  ;;  %s2311_s15 = sphi %s2339_s15, %s14_s15  }
   0x2   : > { %p162_p1 = scmp.lt.s32.totalorder %s2311_s15, 3 }
   0x4   : > { %p163_p2 = pnand %p1891_p0, %p162_p1 }
   0x5   : > { %p188_p3 = scmp.lt.s32.totalorder (!%p163_p2), %s1887_s16, 1 }
   0x6   : > { %166 = sbr.rel (%p163_p2) target bundleno = 411 (0x19b), region = 36 }
   0xb   : > { %v2154_v0 = vld [vmem:[%s3034_s1] sm:$0xf]  ;;  %v2288_v1 = vld [vmem:[%s3034_s1] sm:$0x10]  ;;  %vm847_vm0 = vcmask 1043456   ;;  %vm848_vm1 = vcmask 1044480  }
   0xc   : > { %v2155_v2 = vor.u32 %v2288_v1, %v2154_v0  ;;  %v2313_v3 = vmov 65535   ;;  %s3039_s16 = smov (!%p188_p3, %s1887_s16), 1  ;;  %vm654_vm2 = vcmask 72704   ;;  %v2430_v39 = vld [vmem:[%s3035_s2] ss:$0 sm:$0xff]  ;;  %vm1703_vm3 = vcmask 519168  }
   0xd   : > { %v849_v4 = vsel %vm847_vm0, 4294967295, %v2313_v3  ;;  %s2222_s21 = sshll.u32 %s3039_s16, 9  ;;  %v2435_v40 = vld [vmem:[%s3036_s3] ss:$0 sm:$0xff] }
   0xe   : > { %v850_v5 = vsel %vm848_vm1, %v849_v4, 0  ;;  %s2361_s24 = scalar_lea.vmem %s3033_s0, %s2222_s21  ;;  %s2454_s5 = scalar_lea.vmem %s3037_s4, %s2222_s21 }
   0xf   : > { %v852_v6 = vand.u32 %v2155_v2, %v850_v5  ;;  %v2224_v7 = vld [vmem:[%s2361_s24] sm:$0xff]  ;;  %v2225_v11 = vld [vmem:[%s2361_s24 + $0x8] sm:$0xff]  ;;  %v2226_v15 = vld [vmem:[%s2361_s24 + $0x10] sm:$0xff] }
  0x10   : > { %v2240_v8 = vld [vmem:[%s2361_s24 + $0x80] sm:$0xff]  ;;  %v2241_v12 = vld [vmem:[%s2361_s24 + $0x88] sm:$0xff]  ;;  %v2242_v16 = vld [vmem:[%s2361_s24 + $0x90] sm:$0xff] }
  0x11   : > { %861 = vmatpush.bf16.msra.mxu0 %v852_v6  ;;  %2289 = vmatpush.bf16.msra.mxu1 %v852_v6  ;;  %v2256_v9 = vld [vmem:[%s2361_s24 + $0x100] sm:$0xff]  ;;  %v2257_v13 = vld [vmem:[%s2361_s24 + $0x108] sm:$0xff]  ;;  %v2258_v17 = vld [vmem:[%s2361_s24 + $0x110] sm:$0xff] }
  0x12   : > { %2290 = vmatpush.bf16.msra.mxu2 %v852_v6  ;;  %2291 = vmatpush.bf16.msra.mxu3 %v852_v6  ;;  %v2272_v10 = vld [vmem:[%s2361_s24 + $0x180] sm:$0xff]  ;;  %v2273_v14 = vld [vmem:[%s2361_s24 + $0x188] sm:$0xff]  ;;  %v2274_v18 = vld [vmem:[%s2361_s24 + $0x190] sm:$0xff] }
  0x13   : > { %v2227_v19 = vld [vmem:[%s2361_s24 + $0x18] sm:$0xff]  ;;  %v2228_v23 = vld [vmem:[%s2361_s24 + $0x20] sm:$0xff]  ;;  %v2229_v27 = vld [vmem:[%s2361_s24 + $0x28] sm:$0xff] }
  0x14   : > { %2156 = vmatmul.msk.bf16.vlgmr.msra.gmra.mxu0 %vm654_vm2, %v2224_v7  ;;  %2172 = vmatmul.msk.bf16.vlgmr.msra.gmra.mxu1 %vm654_vm2, %v2240_v8  ;;  %v2243_v20 = vld [vmem:[%s2361_s24 + $0x98] sm:$0xff]  ;;  %v2244_v24 = vld [vmem:[%s2361_s24 + $0xa0] sm:$0xff]  ;;  %v2245_v28 = vld [vmem:[%s2361_s24 + $0xa8] sm:$0xff] }
  0x15   : > { %2188 = vmatmul.msk.bf16.vlgmr.msra.gmra.mxu2 %vm654_vm2, %v2256_v9  ;;  %2204 = vmatmul.msk.bf16.vlgmr.msra.gmra.mxu3 %vm654_vm2, %v2272_v10  ;;  %v2259_v21 = vld [vmem:[%s2361_s24 + $0x118] sm:$0xff]  ;;  %v2260_v25 = vld [vmem:[%s2361_s24 + $0x120] sm:$0xff]  ;;  %v2261_v29 = vld [vmem:[%s2361_s24 + $0x128] sm:$0xff] }
  0x16   : > { %v2275_v22 = vld [vmem:[%s2361_s24 + $0x198] sm:$0xff]  ;;  %v2276_v26 = vld [vmem:[%s2361_s24 + $0x1a0] sm:$0xff]  ;;  %v2277_v30 = vld [vmem:[%s2361_s24 + $0x1a8] sm:$0xff] }
  0x17   : > { %v2230_v31 = vld [vmem:[%s2361_s24 + $0x30] sm:$0xff]  ;;  %v2231_v35 = vld [vmem:[%s2361_s24 + $0x38] sm:$0xff]  ;;  %v2232_v41 = vld [vmem:[%s2361_s24 + $0x40] sm:$0xff] }
  0x18   : > { %v2246_v32 = vld [vmem:[%s2361_s24 + $0xb0] sm:$0xff]  ;;  %v2247_v36 = vld [vmem:[%s2361_s24 + $0xb8] sm:$0xff]  ;;  %v2248_v42 = vld [vmem:[%s2361_s24 + $0xc0] sm:$0xff] }
  0x19   : > { %v2262_v33 = vld [vmem:[%s2361_s24 + $0x130] sm:$0xff]  ;;  %v2263_v37 = vld [vmem:[%s2361_s24 + $0x138] sm:$0xff]  ;;  %v2264_v45 = vld [vmem:[%s2361_s24 + $0x140] sm:$0xff] }
  0x1a   : > { %v2278_v34 = vld [vmem:[%s2361_s24 + $0x1b0] sm:$0xff]  ;;  %v2279_v38 = vld [vmem:[%s2361_s24 + $0x1b8] sm:$0xff]  ;;  %v2280_v46 = vld [vmem:[%s2361_s24 + $0x1c0] sm:$0xff] }
  0x24   : > { %2157 = vmatmul.msk.bf16.gmra.mxu0 %vm654_vm2, %v2225_v11  ;;  %2173 = vmatmul.msk.bf16.gmra.mxu1 %vm654_vm2, %v2241_v12 }
  0x25   : > { %2189 = vmatmul.msk.bf16.gmra.mxu2 %vm654_vm2, %v2257_v13  ;;  %2205 = vmatmul.msk.bf16.gmra.mxu3 %vm654_vm2, %v2273_v14  ;;  %v2233_v13 = vld [vmem:[%s2361_s24 + $0x48] sm:$0xff] }
  0x26   : > { %v2249_v14 = vld [vmem:[%s2361_s24 + $0xc8] sm:$0xff] }
  0x34   : > { %2158 = vmatmul.msk.bf16.gmra.mxu0 %vm654_vm2, %v2226_v15  ;;  %2174 = vmatmul.msk.bf16.gmra.mxu1 %vm654_vm2, %v2242_v16 }
  0x35   : > { %2190 = vmatmul.msk.bf16.gmra.mxu2 %vm654_vm2, %v2258_v17  ;;  %2206 = vmatmul.msk.bf16.gmra.mxu3 %vm654_vm2, %v2274_v18 }
  0x44   : > { %2159 = vmatmul.msk.bf16.gmra.mxu0 %vm654_vm2, %v2227_v19  ;;  %2175 = vmatmul.msk.bf16.gmra.mxu1 %vm654_vm2, %v2243_v20  ;;  %v2265_v19 = vld [vmem:[%s2361_s24 + $0x148] sm:$0xff] }
  0x45   : > { %2191 = vmatmul.msk.bf16.gmra.mxu2 %vm654_vm2, %v2259_v21  ;;  %2207 = vmatmul.msk.bf16.gmra.mxu3 %vm654_vm2, %v2275_v22  ;;  %v2281_v20 = vld [vmem:[%s2361_s24 + $0x1c8] sm:$0xff] }
  0x54   : > { %2160 = vmatmul.msk.bf16.gmra.mxu0 %vm654_vm2, %v2228_v23  ;;  %2176 = vmatmul.msk.bf16.gmra.mxu1 %vm654_vm2, %v2244_v24 }
  0x55   : > { %2192 = vmatmul.msk.bf16.gmra.mxu2 %vm654_vm2, %v2260_v25  ;;  %2208 = vmatmul.msk.bf16.gmra.mxu3 %vm654_vm2, %v2276_v26 }
  0x64   : > { %2161 = vmatmul.msk.bf16.gmra.mxu0 %vm654_vm2, %v2229_v27  ;;  %2177 = vmatmul.msk.bf16.gmra.mxu1 %vm654_vm2, %v2245_v28 }
  0x65   : > { %2193 = vmatmul.msk.bf16.gmra.mxu2 %vm654_vm2, %v2261_v29  ;;  %2209 = vmatmul.msk.bf16.gmra.mxu3 %vm654_vm2, %v2277_v30 }
  0x74   : > { %2162 = vmatmul.msk.bf16.gmra.mxu0 %vm654_vm2, %v2230_v31  ;;  %2178 = vmatmul.msk.bf16.gmra.mxu1 %vm654_vm2, %v2246_v32 }
  0x75   : > { %2194 = vmatmul.msk.bf16.gmra.mxu2 %vm654_vm2, %v2262_v33  ;;  %2210 = vmatmul.msk.bf16.gmra.mxu3 %vm654_vm2, %v2278_v34 }
  0x84   : > { %2163 = vmatmul.msk.bf16.gmra.mxu0 %vm654_vm2, %v2231_v35  ;;  %2179 = vmatmul.msk.bf16.gmra.mxu1 %vm654_vm2, %v2247_v36 }
  0x85   : > { %2195 = vmatmul.msk.bf16.gmra.mxu2 %vm654_vm2, %v2263_v37  ;;  %2211 = vmatmul.msk.bf16.gmra.mxu3 %vm654_vm2, %v2279_v38 }
  0x91   : > { %v863_v43 = vpop.f32.mrf.mxu0  ;;  %v943_v44 = vpop.f32.mrf.mxu1 }
  0x92   : > { %v1187_v47 = vmul.f32 %v2430_v39, %v863_v43  ;;  %v1219_v48 = vmul.f32 %v2430_v39, %v943_v44 }
  0x94   : > { %v1319_v49 = vadd.f32 %v2435_v40, %v1187_v47  ;;  %v1351_v50 = vadd.f32 %v2435_v40, %v1219_v48  ;;  %2164 = vmatmul.msk.bf16.gmra.mxu0 %vm654_vm2, %v2232_v41  ;;  %2180 = vmatmul.msk.bf16.gmra.mxu1 %vm654_vm2, %v2248_v42 }
  0x95   : > { %2196 = vmatmul.msk.bf16.gmra.mxu2 %vm654_vm2, %v2264_v45  ;;  %2212 = vmatmul.msk.bf16.gmra.mxu3 %vm654_vm2, %v2280_v46 }
  0x96   : > { %v1447_v51 = vmax.f32 %v1319_v49, 0.0  ;;  %v1479_v52 = vmax.f32 %v1351_v50, 0.0 }
  0x98   : > { %v1575_v53 = vpack.c.bf16 %v1447_v51, %v1447_v51  ;;  %v1607_v54 = vpack.c.bf16 %v1479_v52, %v1479_v52  ;;  %v1023_v55 = vpop.f32.mrf.mxu2  ;;  %v1103_v56 = vpop.f32.mrf.mxu3 }
  0x99   : > { %v1251_v57 = vmul.f32 %v2430_v39, %v1023_v55  ;;  %v1283_v58 = vmul.f32 %v2430_v39, %v1103_v56  ;;  %v865_v59 = vpop.f32.mrf.mxu0  ;;  %v945_v60 = vpop.f32.mrf.mxu1 }
  0x9a   : > { %1704 = vst.msk [vmem:[%s2454_s5] sm:$0xf] %vm1703_vm3, %v1575_v53  ;;  %v1188_v61 = vmul.f32 %v2430_v39, %v865_v59  ;;  %v1220_v62 = vmul.f32 %v2430_v39, %v945_v60  ;;  %v2234_v59 = vld [vmem:[%s2361_s24 + $0x50] sm:$0xff] }
  0x9b   : > { %1736 = vst.msk [vmem:[%s2454_s5 + $0x80] sm:$0xf] %vm1703_vm3, %v1607_v54  ;;  %v1383_v63 = vadd.f32 %v2435_v40, %v1251_v57  ;;  %v1415_v0 = vadd.f32 %v2435_v40, %v1283_v58  ;;  %v2250_v60 = vld [vmem:[%s2361_s24 + $0xd0] sm:$0xff] }
  0x9c   : > { %v1320_v1 = vadd.f32 %v2435_v40, %v1188_v61  ;;  %v1352_v2 = vadd.f32 %v2435_v40, %v1220_v62 }
  0x9d   : > { %v1511_v3 = vmax.f32 %v1383_v63, 0.0  ;;  %v1543_v4 = vmax.f32 %v1415_v0, 0.0 }
  0x9e   : > { %v1448_v5 = vmax.f32 %v1320_v1, 0.0  ;;  %v1480_v6 = vmax.f32 %v1352_v2, 0.0  ;;  %v2266_v1 = vld [vmem:[%s2361_s24 + $0x150] sm:$0xff] }
  0x9f   : > { %v1639_v7 = vpack.c.bf16 %v1511_v3, %v1511_v3  ;;  %v1671_v8 = vpack.c.bf16 %v1543_v4, %v1543_v4  ;;  %v2282_v2 = vld [vmem:[%s2361_s24 + $0x1d0] sm:$0xff] }
  0xa0   : > { %v1576_v9 = vpack.c.bf16 %v1448_v5, %v1448_v5  ;;  %v1608_v10 = vpack.c.bf16 %v1480_v6, %v1480_v6  ;;  %v1025_v11 = vpop.f32.mrf.mxu2  ;;  %v1105_v12 = vpop.f32.mrf.mxu3 }
  0xa1   : > { %1768 = vst.msk [vmem:[%s2454_s5 + $0x100] sm:$0xf] %vm1703_vm3, %v1639_v7  ;;  %v1252_v15 = vmul.f32 %v2430_v39, %v1025_v11  ;;  %v1284_v16 = vmul.f32 %v2430_v39, %v1105_v12  ;;  %v868_v17 = vpop.f32.mrf.mxu0  ;;  %v948_v18 = vpop.f32.mrf.mxu1 }
  0xa2   : > { %1800 = vst.msk [vmem:[%s2454_s5 + $0x180] sm:$0xf] %vm1703_vm3, %v1671_v8  ;;  %v1189_v21 = vmul.f32 %v2430_v39, %v868_v17  ;;  %v1221_v22 = vmul.f32 %v2430_v39, %v948_v18 }
  0xa3   : > { %1705 = vst.msk [vmem:[%s2454_s5 + $0x4] sm:$0xf] %vm1703_vm3, %v1576_v9  ;;  %v1384_v23 = vadd.f32 %v2435_v40, %v1252_v15  ;;  %v1416_v24 = vadd.f32 %v2435_v40, %v1284_v16 }
  0xa4   : > { %1737 = vst.msk [vmem:[%s2454_s5 + $0x84] sm:$0xf] %vm1703_vm3, %v1608_v10  ;;  %v1321_v25 = vadd.f32 %v2435_v40, %v1189_v21  ;;  %v1353_v26 = vadd.f32 %v2435_v40, %v1221_v22  ;;  %2165 = vmatmul.msk.bf16.gmra.mxu0 %vm654_vm2, %v2233_v13  ;;  %2181 = vmatmul.msk.bf16.gmra.mxu1 %vm654_vm2, %v2249_v14 }
  0xa5   : > { %v1512_v27 = vmax.f32 %v1384_v23, 0.0  ;;  %v1544_v28 = vmax.f32 %v1416_v24, 0.0  ;;  %2197 = vmatmul.msk.bf16.gmra.mxu2 %vm654_vm2, %v2265_v19  ;;  %2213 = vmatmul.msk.bf16.gmra.mxu3 %vm654_vm2, %v2281_v20 }
  0xa6   : > { %v1449_v29 = vmax.f32 %v1321_v25, 0.0  ;;  %v1481_v30 = vmax.f32 %v1353_v26, 0.0 }
  0xa7   : > { %v1640_v31 = vpack.c.bf16 %v1512_v27, %v1512_v27  ;;  %v1672_v32 = vpack.c.bf16 %v1544_v28, %v1544_v28 }
  0xa8   : > { %v1577_v33 = vpack.c.bf16 %v1449_v29, %v1449_v29  ;;  %v1609_v34 = vpack.c.bf16 %v1481_v30, %v1481_v30  ;;  %v1028_v35 = vpop.f32.mrf.mxu2  ;;  %v1108_v36 = vpop.f32.mrf.mxu3 }
  0xa9   : > { %1769 = vst.msk [vmem:[%s2454_s5 + $0x104] sm:$0xf] %vm1703_vm3, %v1640_v31  ;;  %v1253_v37 = vmul.f32 %v2430_v39, %v1028_v35  ;;  %v1285_v38 = vmul.f32 %v2430_v39, %v1108_v36  ;;  %v870_v41 = vpop.f32.mrf.mxu0  ;;  %v950_v42 = vpop.f32.mrf.mxu1 }
  0xaa   : > { %1801 = vst.msk [vmem:[%s2454_s5 + $0x184] sm:$0xf] %vm1703_vm3, %v1672_v32  ;;  %v1190_v43 = vmul.f32 %v2430_v39, %v870_v41  ;;  %v1222_v44 = vmul.f32 %v2430_v39, %v950_v42  ;;  %v2235_v41 = vld [vmem:[%s2361_s24 + $0x58] sm:$0xff] }
  0xab   : > { %1706 = vst.msk [vmem:[%s2454_s5 + $0x8] sm:$0xf] %vm1703_vm3, %v1577_v33  ;;  %v1385_v45 = vadd.f32 %v2435_v40, %v1253_v37  ;;  %v1417_v46 = vadd.f32 %v2435_v40, %v1285_v38  ;;  %v2251_v42 = vld [vmem:[%s2361_s24 + $0xd8] sm:$0xff] }
  0xac   : > { %1738 = vst.msk [vmem:[%s2454_s5 + $0x88] sm:$0xf] %vm1703_vm3, %v1609_v34  ;;  %v1322_v47 = vadd.f32 %v2435_v40, %v1190_v43  ;;  %v1354_v48 = vadd.f32 %v2435_v40, %v1222_v44 }
  0xad   : > { %v1513_v49 = vmax.f32 %v1385_v45, 0.0  ;;  %v1545_v50 = vmax.f32 %v1417_v46, 0.0 }
  0xae   : > { %v1450_v51 = vmax.f32 %v1322_v47, 0.0  ;;  %v1482_v52 = vmax.f32 %v1354_v48, 0.0  ;;  %v2267_v47 = vld [vmem:[%s2361_s24 + $0x158] sm:$0xff] }
  0xaf   : > { %v1641_v53 = vpack.c.bf16 %v1513_v49, %v1513_v49  ;;  %v1673_v54 = vpack.c.bf16 %v1545_v50, %v1545_v50  ;;  %v2283_v48 = vld [vmem:[%s2361_s24 + $0x1d8] sm:$0xff] }
  0xb0   : > { %v1578_v55 = vpack.c.bf16 %v1450_v51, %v1450_v51  ;;  %v1610_v56 = vpack.c.bf16 %v1482_v52, %v1482_v52  ;;  %v1030_v57 = vpop.f32.mrf.mxu2  ;;  %v1110_v58 = vpop.f32.mrf.mxu3 }
  0xb1   : > { %1770 = vst.msk [vmem:[%s2454_s5 + $0x108] sm:$0xf] %vm1703_vm3, %v1641_v53  ;;  %v1254_v61 = vmul.f32 %v2430_v39, %v1030_v57  ;;  %v1286_v62 = vmul.f32 %v2430_v39, %v1110_v58  ;;  %v873_v63 = vpop.f32.mrf.mxu0  ;;  %v953_v0 = vpop.f32.mrf.mxu1 }
  0xb2   : > { %1802 = vst.msk [vmem:[%s2454_s5 + $0x188] sm:$0xf] %vm1703_vm3, %v1673_v54  ;;  %v1191_v3 = vmul.f32 %v2430_v39, %v873_v63  ;;  %v1223_v4 = vmul.f32 %v2430_v39, %v953_v0 }
  0xb3   : > { %1707 = vst.msk [vmem:[%s2454_s5 + $0xc] sm:$0xf] %vm1703_vm3, %v1578_v55  ;;  %v1386_v5 = vadd.f32 %v2435_v40, %v1254_v61  ;;  %v1418_v6 = vadd.f32 %v2435_v40, %v1286_v62 }
  0xb4   : > { %1739 = vst.msk [vmem:[%s2454_s5 + $0x8c] sm:$0xf] %vm1703_vm3, %v1610_v56  ;;  %v1323_v7 = vadd.f32 %v2435_v40, %v1191_v3  ;;  %v1355_v8 = vadd.f32 %v2435_v40, %v1223_v4  ;;  %2166 = vmatmul.msk.bf16.gmra.mxu0 %vm654_vm2, %v2234_v59  ;;  %2182 = vmatmul.msk.bf16.gmra.mxu1 %vm654_vm2, %v2250_v60 }
  0xb5   : > { %v1514_v9 = vmax.f32 %v1386_v5, 0.0  ;;  %v1546_v10 = vmax.f32 %v1418_v6, 0.0  ;;  %2198 = vmatmul.msk.bf16.gmra.mxu2 %vm654_vm2, %v2266_v1  ;;  %2214 = vmatmul.msk.bf16.gmra.mxu3 %vm654_vm2, %v2282_v2 }
  0xb6   : > { %v1451_v11 = vmax.f32 %v1323_v7, 0.0  ;;  %v1483_v12 = vmax.f32 %v1355_v8, 0.0 }
  0xb7   : > { %v1642_v13 = vpack.c.bf16 %v1514_v9, %v1514_v9  ;;  %v1674_v14 = vpack.c.bf16 %v1546_v10, %v1546_v10 }
  0xb8   : > { %v1579_v15 = vpack.c.bf16 %v1451_v11, %v1451_v11  ;;  %v1611_v16 = vpack.c.bf16 %v1483_v12, %v1483_v12  ;;  %v1033_v17 = vpop.f32.mrf.mxu2  ;;  %v1113_v18 = vpop.f32.mrf.mxu3 }
  0xb9   : > { %1771 = vst.msk [vmem:[%s2454_s5 + $0x10c] sm:$0xf] %vm1703_vm3, %v1642_v13  ;;  %v1255_v19 = vmul.f32 %v2430_v39, %v1033_v17  ;;  %v1287_v20 = vmul.f32 %v2430_v39, %v1113_v18  ;;  %v875_v21 = vpop.f32.mrf.mxu0  ;;  %v955_v22 = vpop.f32.mrf.mxu1 }
  0xba   : > { %1803 = vst.msk [vmem:[%s2454_s5 + $0x18c] sm:$0xf] %vm1703_vm3, %v1674_v14  ;;  %v1192_v23 = vmul.f32 %v2430_v39, %v875_v21  ;;  %v1224_v24 = vmul.f32 %v2430_v39, %v955_v22  ;;  %v2236_v21 = vld [vmem:[%s2361_s24 + $0x60] sm:$0xff] }
  0xbb   : > { %1708 = vst.msk [vmem:[%s2454_s5 + $0x10] sm:$0xf] %vm1703_vm3, %v1579_v15  ;;  %v1387_v25 = vadd.f32 %v2435_v40, %v1255_v19  ;;  %v1419_v26 = vadd.f32 %v2435_v40, %v1287_v20  ;;  %v2252_v22 = vld [vmem:[%s2361_s24 + $0xe0] sm:$0xff] }
  0xbc   : > { %1740 = vst.msk [vmem:[%s2454_s5 + $0x90] sm:$0xf] %vm1703_vm3, %v1611_v16  ;;  %v1324_v27 = vadd.f32 %v2435_v40, %v1192_v23  ;;  %v1356_v28 = vadd.f32 %v2435_v40, %v1224_v24 }
  0xbd   : > { %v1515_v29 = vmax.f32 %v1387_v25, 0.0  ;;  %v1547_v30 = vmax.f32 %v1419_v26, 0.0 }
  0xbe   : > { %v1452_v31 = vmax.f32 %v1324_v27, 0.0  ;;  %v1484_v32 = vmax.f32 %v1356_v28, 0.0  ;;  %v2268_v27 = vld [vmem:[%s2361_s24 + $0x160] sm:$0xff] }
  0xbf   : > { %v1643_v33 = vpack.c.bf16 %v1515_v29, %v1515_v29  ;;  %v1675_v34 = vpack.c.bf16 %v1547_v30, %v1547_v30  ;;  %v2284_v28 = vld [vmem:[%s2361_s24 + $0x1e0] sm:$0xff] }
  0xc0   : > { %v1580_v35 = vpack.c.bf16 %v1452_v31, %v1452_v31  ;;  %v1612_v36 = vpack.c.bf16 %v1484_v32, %v1484_v32  ;;  %v1035_v37 = vpop.f32.mrf.mxu2  ;;  %v1115_v38 = vpop.f32.mrf.mxu3 }
  0xc1   : > { %1772 = vst.msk [vmem:[%s2454_s5 + $0x110] sm:$0xf] %vm1703_vm3, %v1643_v33  ;;  %v1256_v43 = vmul.f32 %v2430_v39, %v1035_v37  ;;  %v1288_v44 = vmul.f32 %v2430_v39, %v1115_v38  ;;  %v878_v45 = vpop.f32.mrf.mxu0  ;;  %v958_v46 = vpop.f32.mrf.mxu1 }
  0xc2   : > { %1804 = vst.msk [vmem:[%s2454_s5 + $0x190] sm:$0xf] %vm1703_vm3, %v1675_v34  ;;  %v1193_v49 = vmul.f32 %v2430_v39, %v878_v45  ;;  %v1225_v50 = vmul.f32 %v2430_v39, %v958_v46 }
  0xc3   : > { %1709 = vst.msk [vmem:[%s2454_s5 + $0x14] sm:$0xf] %vm1703_vm3, %v1580_v35  ;;  %v1388_v51 = vadd.f32 %v2435_v40, %v1256_v43  ;;  %v1420_v52 = vadd.f32 %v2435_v40, %v1288_v44 }
  0xc4   : > { %1741 = vst.msk [vmem:[%s2454_s5 + $0x94] sm:$0xf] %vm1703_vm3, %v1612_v36  ;;  %v1325_v53 = vadd.f32 %v2435_v40, %v1193_v49  ;;  %v1357_v54 = vadd.f32 %v2435_v40, %v1225_v50  ;;  %2167 = vmatmul.msk.bf16.gmra.mxu0 %vm654_vm2, %v2235_v41  ;;  %2183 = vmatmul.msk.bf16.gmra.mxu1 %vm654_vm2, %v2251_v42 }
  0xc5   : > { %v1516_v55 = vmax.f32 %v1388_v51, 0.0  ;;  %v1548_v56 = vmax.f32 %v1420_v52, 0.0  ;;  %2199 = vmatmul.msk.bf16.gmra.mxu2 %vm654_vm2, %v2267_v47  ;;  %2215 = vmatmul.msk.bf16.gmra.mxu3 %vm654_vm2, %v2283_v48 }
  0xc6   : > { %v1453_v57 = vmax.f32 %v1325_v53, 0.0  ;;  %v1485_v58 = vmax.f32 %v1357_v54, 0.0 }
  0xc7   : > { %v1644_v59 = vpack.c.bf16 %v1516_v55, %v1516_v55  ;;  %v1676_v60 = vpack.c.bf16 %v1548_v56, %v1548_v56 }
  0xc8   : > { %v1581_v61 = vpack.c.bf16 %v1453_v57, %v1453_v57  ;;  %v1613_v62 = vpack.c.bf16 %v1485_v58, %v1485_v58  ;;  %v1038_v63 = vpop.f32.mrf.mxu2  ;;  %v1118_v0 = vpop.f32.mrf.mxu3 }
  0xc9   : > { %1773 = vst.msk [vmem:[%s2454_s5 + $0x114] sm:$0xf] %vm1703_vm3, %v1644_v59  ;;  %v1257_v1 = vmul.f32 %v2430_v39, %v1038_v63  ;;  %v1289_v2 = vmul.f32 %v2430_v39, %v1118_v0  ;;  %v880_v3 = vpop.f32.mrf.mxu0  ;;  %v960_v4 = vpop.f32.mrf.mxu1 }
  0xca   : > { %1805 = vst.msk [vmem:[%s2454_s5 + $0x194] sm:$0xf] %vm1703_vm3, %v1676_v60  ;;  %v1194_v5 = vmul.f32 %v2430_v39, %v880_v3  ;;  %v1226_v6 = vmul.f32 %v2430_v39, %v960_v4  ;;  %v2237_v3 = vld [vmem:[%s2361_s24 + $0x68] sm:$0xff] }
  0xcb   : > { %1710 = vst.msk [vmem:[%s2454_s5 + $0x18] sm:$0xf] %vm1703_vm3, %v1581_v61  ;;  %v1389_v7 = vadd.f32 %v2435_v40, %v1257_v1  ;;  %v1421_v8 = vadd.f32 %v2435_v40, %v1289_v2  ;;  %v2253_v4 = vld [vmem:[%s2361_s24 + $0xe8] sm:$0xff] }
  0xcc   : > { %1742 = vst.msk [vmem:[%s2454_s5 + $0x98] sm:$0xf] %vm1703_vm3, %v1613_v62  ;;  %v1326_v9 = vadd.f32 %v2435_v40, %v1194_v5  ;;  %v1358_v10 = vadd.f32 %v2435_v40, %v1226_v6 }
  0xcd   : > { %v1517_v11 = vmax.f32 %v1389_v7, 0.0  ;;  %v1549_v12 = vmax.f32 %v1421_v8, 0.0 }
  0xce   : > { %v1454_v13 = vmax.f32 %v1326_v9, 0.0  ;;  %v1486_v14 = vmax.f32 %v1358_v10, 0.0  ;;  %v2269_v9 = vld [vmem:[%s2361_s24 + $0x168] sm:$0xff] }
  0xcf   : > { %v1645_v15 = vpack.c.bf16 %v1517_v11, %v1517_v11  ;;  %v1677_v16 = vpack.c.bf16 %v1549_v12, %v1549_v12  ;;  %v2285_v10 = vld [vmem:[%s2361_s24 + $0x1e8] sm:$0xff] }
  0xd0   : > { %v1582_v17 = vpack.c.bf16 %v1454_v13, %v1454_v13  ;;  %v1614_v18 = vpack.c.bf16 %v1486_v14, %v1486_v14  ;;  %v1040_v19 = vpop.f32.mrf.mxu2  ;;  %v1120_v20 = vpop.f32.mrf.mxu3 }
  0xd1   : > { %1774 = vst.msk [vmem:[%s2454_s5 + $0x118] sm:$0xf] %vm1703_vm3, %v1645_v15  ;;  %v1258_v23 = vmul.f32 %v2430_v39, %v1040_v19  ;;  %v1290_v24 = vmul.f32 %v2430_v39, %v1120_v20  ;;  %v883_v25 = vpop.f32.mrf.mxu0  ;;  %v963_v26 = vpop.f32.mrf.mxu1 }
  0xd2   : > { %1806 = vst.msk [vmem:[%s2454_s5 + $0x198] sm:$0xf] %vm1703_vm3, %v1677_v16  ;;  %v1195_v29 = vmul.f32 %v2430_v39, %v883_v25  ;;  %v1227_v30 = vmul.f32 %v2430_v39, %v963_v26 }
  0xd3   : > { %1711 = vst.msk [vmem:[%s2454_s5 + $0x1c] sm:$0xf] %vm1703_vm3, %v1582_v17  ;;  %v1390_v31 = vadd.f32 %v2435_v40, %v1258_v23  ;;  %v1422_v32 = vadd.f32 %v2435_v40, %v1290_v24 }
  0xd4   : > { %1743 = vst.msk [vmem:[%s2454_s5 + $0x9c] sm:$0xf] %vm1703_vm3, %v1614_v18  ;;  %v1327_v33 = vadd.f32 %v2435_v40, %v1195_v29  ;;  %v1359_v34 = vadd.f32 %v2435_v40, %v1227_v30  ;;  %2168 = vmatmul.msk.bf16.gmra.mxu0 %vm654_vm2, %v2236_v21  ;;  %2184 = vmatmul.msk.bf16.gmra.mxu1 %vm654_vm2, %v2252_v22 }
  0xd5   : > { %v1518_v35 = vmax.f32 %v1390_v31, 0.0  ;;  %v1550_v36 = vmax.f32 %v1422_v32, 0.0  ;;  %2200 = vmatmul.msk.bf16.gmra.mxu2 %vm654_vm2, %v2268_v27  ;;  %2216 = vmatmul.msk.bf16.gmra.mxu3 %vm654_vm2, %v2284_v28 }
  0xd6   : > { %v1455_v37 = vmax.f32 %v1327_v33, 0.0  ;;  %v1487_v38 = vmax.f32 %v1359_v34, 0.0 }
  0xd7   : > { %v1646_v41 = vpack.c.bf16 %v1518_v35, %v1518_v35  ;;  %v1678_v42 = vpack.c.bf16 %v1550_v36, %v1550_v36 }
  0xd8   : > { %v1583_v43 = vpack.c.bf16 %v1455_v37, %v1455_v37  ;;  %v1615_v44 = vpack.c.bf16 %v1487_v38, %v1487_v38  ;;  %v1043_v45 = vpop.f32.mrf.mxu2  ;;  %v1123_v46 = vpop.f32.mrf.mxu3 }
  0xd9   : > { %1775 = vst.msk [vmem:[%s2454_s5 + $0x11c] sm:$0xf] %vm1703_vm3, %v1646_v41  ;;  %v1259_v47 = vmul.f32 %v2430_v39, %v1043_v45  ;;  %v1291_v48 = vmul.f32 %v2430_v39, %v1123_v46  ;;  %v885_v49 = vpop.f32.mrf.mxu0  ;;  %v965_v50 = vpop.f32.mrf.mxu1 }
  0xda   : > { %1807 = vst.msk [vmem:[%s2454_s5 + $0x19c] sm:$0xf] %vm1703_vm3, %v1678_v42  ;;  %v1196_v51 = vmul.f32 %v2430_v39, %v885_v49  ;;  %v1228_v52 = vmul.f32 %v2430_v39, %v965_v50  ;;  %v2238_v49 = vld [vmem:[%s2361_s24 + $0x70] sm:$0xff] }
  0xdb   : > { %1712 = vst.msk [vmem:[%s2454_s5 + $0x20] sm:$0xf] %vm1703_vm3, %v1583_v43  ;;  %v1391_v53 = vadd.f32 %v2435_v40, %v1259_v47  ;;  %v1423_v54 = vadd.f32 %v2435_v40, %v1291_v48  ;;  %v2254_v50 = vld [vmem:[%s2361_s24 + $0xf0] sm:$0xff] }
  0xdc   : > { %1744 = vst.msk [vmem:[%s2454_s5 + $0xa0] sm:$0xf] %vm1703_vm3, %v1615_v44  ;;  %v1328_v55 = vadd.f32 %v2435_v40, %v1196_v51  ;;  %v1360_v56 = vadd.f32 %v2435_v40, %v1228_v52 }
  0xdd   : > { %v1519_v57 = vmax.f32 %v1391_v53, 0.0  ;;  %v1551_v58 = vmax.f32 %v1423_v54, 0.0 }
  0xde   : > { %v1456_v59 = vmax.f32 %v1328_v55, 0.0  ;;  %v1488_v60 = vmax.f32 %v1360_v56, 0.0  ;;  %v2270_v55 = vld [vmem:[%s2361_s24 + $0x170] sm:$0xff] }
  0xdf   : > { %v1647_v61 = vpack.c.bf16 %v1519_v57, %v1519_v57  ;;  %v1679_v62 = vpack.c.bf16 %v1551_v58, %v1551_v58  ;;  %v2286_v56 = vld [vmem:[%s2361_s24 + $0x1f0] sm:$0xff] }
  0xe0   : > { %v1584_v63 = vpack.c.bf16 %v1456_v59, %v1456_v59  ;;  %v1616_v0 = vpack.c.bf16 %v1488_v60, %v1488_v60  ;;  %v1045_v1 = vpop.f32.mrf.mxu2  ;;  %v1125_v2 = vpop.f32.mrf.mxu3 }
  0xe1   : > { %1776 = vst.msk [vmem:[%s2454_s5 + $0x120] sm:$0xf] %vm1703_vm3, %v1647_v61  ;;  %v1260_v5 = vmul.f32 %v2430_v39, %v1045_v1  ;;  %v1292_v6 = vmul.f32 %v2430_v39, %v1125_v2  ;;  %v888_v7 = vpop.f32.mrf.mxu0  ;;  %v968_v8 = vpop.f32.mrf.mxu1 }
  0xe2   : > { %1808 = vst.msk [vmem:[%s2454_s5 + $0x1a0] sm:$0xf] %vm1703_vm3, %v1679_v62  ;;  %v1197_v11 = vmul.f32 %v2430_v39, %v888_v7  ;;  %v1229_v12 = vmul.f32 %v2430_v39, %v968_v8 }
  0xe3   : > { %1713 = vst.msk [vmem:[%s2454_s5 + $0x24] sm:$0xf] %vm1703_vm3, %v1584_v63  ;;  %v1392_v13 = vadd.f32 %v2435_v40, %v1260_v5  ;;  %v1424_v14 = vadd.f32 %v2435_v40, %v1292_v6 }
  0xe4   : > { %1745 = vst.msk [vmem:[%s2454_s5 + $0xa4] sm:$0xf] %vm1703_vm3, %v1616_v0  ;;  %v1329_v15 = vadd.f32 %v2435_v40, %v1197_v11  ;;  %v1361_v16 = vadd.f32 %v2435_v40, %v1229_v12  ;;  %2169 = vmatmul.msk.bf16.gmra.mxu0 %vm654_vm2, %v2237_v3  ;;  %2185 = vmatmul.msk.bf16.gmra.mxu1 %vm654_vm2, %v2253_v4 }
  0xe5   : > { %v1520_v17 = vmax.f32 %v1392_v13, 0.0  ;;  %v1552_v18 = vmax.f32 %v1424_v14, 0.0  ;;  %2201 = vmatmul.msk.bf16.gmra.mxu2 %vm654_vm2, %v2269_v9  ;;  %2217 = vmatmul.msk.bf16.gmra.mxu3 %vm654_vm2, %v2285_v10 }
  0xe6   : > { %v1457_v19 = vmax.f32 %v1329_v15, 0.0  ;;  %v1489_v20 = vmax.f32 %v1361_v16, 0.0 }
  0xe7   : > { %v1648_v21 = vpack.c.bf16 %v1520_v17, %v1520_v17  ;;  %v1680_v22 = vpack.c.bf16 %v1552_v18, %v1552_v18 }
  0xe8   : > { %v1585_v23 = vpack.c.bf16 %v1457_v19, %v1457_v19  ;;  %v1617_v24 = vpack.c.bf16 %v1489_v20, %v1489_v20  ;;  %v1048_v25 = vpop.f32.mrf.mxu2  ;;  %v1128_v26 = vpop.f32.mrf.mxu3 }
  0xe9   : > { %1777 = vst.msk [vmem:[%s2454_s5 + $0x124] sm:$0xf] %vm1703_vm3, %v1648_v21  ;;  %v1261_v27 = vmul.f32 %v2430_v39, %v1048_v25  ;;  %v1293_v28 = vmul.f32 %v2430_v39, %v1128_v26  ;;  %v890_v29 = vpop.f32.mrf.mxu0  ;;  %v970_v30 = vpop.f32.mrf.mxu1 }
  0xea   : > { %1809 = vst.msk [vmem:[%s2454_s5 + $0x1a4] sm:$0xf] %vm1703_vm3, %v1680_v22  ;;  %v1198_v31 = vmul.f32 %v2430_v39, %v890_v29  ;;  %v1230_v32 = vmul.f32 %v2430_v39, %v970_v30  ;;  %v2239_v29 = vld [vmem:[%s2361_s24 + $0x78] sm:$0xff] }
  0xeb   : > { %1714 = vst.msk [vmem:[%s2454_s5 + $0x28] sm:$0xf] %vm1703_vm3, %v1585_v23  ;;  %v1393_v33 = vadd.f32 %v2435_v40, %v1261_v27  ;;  %v1425_v34 = vadd.f32 %v2435_v40, %v1293_v28  ;;  %v2255_v30 = vld [vmem:[%s2361_s24 + $0xf8] sm:$0xff] }
  0xec   : > { %1746 = vst.msk [vmem:[%s2454_s5 + $0xa8] sm:$0xf] %vm1703_vm3, %v1617_v24  ;;  %v1330_v35 = vadd.f32 %v2435_v40, %v1198_v31  ;;  %v1362_v36 = vadd.f32 %v2435_v40, %v1230_v32 }
  0xed   : > { %v1521_v37 = vmax.f32 %v1393_v33, 0.0  ;;  %v1553_v38 = vmax.f32 %v1425_v34, 0.0 }
  0xee   : > { %v1458_v41 = vmax.f32 %v1330_v35, 0.0  ;;  %v1490_v42 = vmax.f32 %v1362_v36, 0.0  ;;  %v2271_v35 = vld [vmem:[%s2361_s24 + $0x178] sm:$0xff] }
  0xef   : > { %v1649_v43 = vpack.c.bf16 %v1521_v37, %v1521_v37  ;;  %v1681_v44 = vpack.c.bf16 %v1553_v38, %v1553_v38  ;;  %v2287_v36 = vld [vmem:[%s2361_s24 + $0x1f8] sm:$0xff] }
  0xf0   : > { %v1586_v45 = vpack.c.bf16 %v1458_v41, %v1458_v41  ;;  %v1618_v46 = vpack.c.bf16 %v1490_v42, %v1490_v42  ;;  %v1050_v47 = vpop.f32.mrf.mxu2  ;;  %v1130_v48 = vpop.f32.mrf.mxu3 }
  0xf1   : > { %1778 = vst.msk [vmem:[%s2454_s5 + $0x128] sm:$0xf] %vm1703_vm3, %v1649_v43  ;;  %v1262_v51 = vmul.f32 %v2430_v39, %v1050_v47  ;;  %v1294_v52 = vmul.f32 %v2430_v39, %v1130_v48  ;;  %v893_v53 = vpop.f32.mrf.mxu0  ;;  %v973_v54 = vpop.f32.mrf.mxu1 }
  0xf2   : > { %1810 = vst.msk [vmem:[%s2454_s5 + $0x1a8] sm:$0xf] %vm1703_vm3, %v1681_v44  ;;  %v1199_v57 = vmul.f32 %v2430_v39, %v893_v53  ;;  %v1231_v58 = vmul.f32 %v2430_v39, %v973_v54 }
  0xf3   : > { %1715 = vst.msk [vmem:[%s2454_s5 + $0x2c] sm:$0xf] %vm1703_vm3, %v1586_v45  ;;  %v1394_v59 = vadd.f32 %v2435_v40, %v1262_v51  ;;  %v1426_v60 = vadd.f32 %v2435_v40, %v1294_v52 }
  0xf4   : > { %1747 = vst.msk [vmem:[%s2454_s5 + $0xac] sm:$0xf] %vm1703_vm3, %v1618_v46  ;;  %v1331_v61 = vadd.f32 %v2435_v40, %v1199_v57  ;;  %v1363_v62 = vadd.f32 %v2435_v40, %v1231_v58  ;;  %2170 = vmatmul.msk.bf16.gmra.mxu0 %vm654_vm2, %v2238_v49  ;;  %2186 = vmatmul.msk.bf16.gmra.mxu1 %vm654_vm2, %v2254_v50 }
  0xf5   : > { %v1522_v63 = vmax.f32 %v1394_v59, 0.0  ;;  %v1554_v0 = vmax.f32 %v1426_v60, 0.0  ;;  %2202 = vmatmul.msk.bf16.gmra.mxu2 %vm654_vm2, %v2270_v55  ;;  %2218 = vmatmul.msk.bf16.gmra.mxu3 %vm654_vm2, %v2286_v56 }
  0xf6   : > { %v1459_v1 = vmax.f32 %v1331_v61, 0.0  ;;  %v1491_v2 = vmax.f32 %v1363_v62, 0.0 }
  0xf7   : > { %v1650_v3 = vpack.c.bf16 %v1522_v63, %v1522_v63  ;;  %v1682_v4 = vpack.c.bf16 %v1554_v0, %v1554_v0 }
  0xf8   : > { %v1587_v5 = vpack.c.bf16 %v1459_v1, %v1459_v1  ;;  %v1619_v6 = vpack.c.bf16 %v1491_v2, %v1491_v2  ;;  %v1053_v7 = vpop.f32.mrf.mxu2  ;;  %v1133_v8 = vpop.f32.mrf.mxu3 }
  0xf9   : > { %1779 = vst.msk [vmem:[%s2454_s5 + $0x12c] sm:$0xf] %vm1703_vm3, %v1650_v3  ;;  %v1263_v9 = vmul.f32 %v2430_v39, %v1053_v7  ;;  %v1295_v10 = vmul.f32 %v2430_v39, %v1133_v8  ;;  %v895_v11 = vpop.f32.mrf.mxu0  ;;  %v975_v12 = vpop.f32.mrf.mxu1 }
  0xfa   : > { %1811 = vst.msk [vmem:[%s2454_s5 + $0x1ac] sm:$0xf] %vm1703_vm3, %v1682_v4  ;;  %v1200_v13 = vmul.f32 %v2430_v39, %v895_v11  ;;  %v1232_v14 = vmul.f32 %v2430_v39, %v975_v12 }
  0xfb   : > { %1716 = vst.msk [vmem:[%s2454_s5 + $0x30] sm:$0xf] %vm1703_vm3, %v1587_v5  ;;  %v1395_v15 = vadd.f32 %v2435_v40, %v1263_v9  ;;  %v1427_v16 = vadd.f32 %v2435_v40, %v1295_v10 }
  0xfc   : > { %1748 = vst.msk [vmem:[%s2454_s5 + $0xb0] sm:$0xf] %vm1703_vm3, %v1619_v6  ;;  %v1332_v17 = vadd.f32 %v2435_v40, %v1200_v13  ;;  %v1364_v18 = vadd.f32 %v2435_v40, %v1232_v14 }
  0xfd   : > { %v1523_v19 = vmax.f32 %v1395_v15, 0.0  ;;  %v1555_v20 = vmax.f32 %v1427_v16, 0.0 }
  0xfe   : > { %v1460_v21 = vmax.f32 %v1332_v17, 0.0  ;;  %v1492_v22 = vmax.f32 %v1364_v18, 0.0 }
  0xff   : > { %v1651_v23 = vpack.c.bf16 %v1523_v19, %v1523_v19  ;;  %v1683_v24 = vpack.c.bf16 %v1555_v20, %v1555_v20 }
 0x100   : > { %v1588_v25 = vpack.c.bf16 %v1460_v21, %v1460_v21  ;;  %v1620_v26 = vpack.c.bf16 %v1492_v22, %v1492_v22  ;;  %v1055_v27 = vpop.f32.mrf.mxu2  ;;  %v1135_v28 = vpop.f32.mrf.mxu3 }
 0x101   : > { %1780 = vst.msk [vmem:[%s2454_s5 + $0x130] sm:$0xf] %vm1703_vm3, %v1651_v23  ;;  %v1264_v31 = vmul.f32 %v2430_v39, %v1055_v27  ;;  %v1296_v32 = vmul.f32 %v2430_v39, %v1135_v28  ;;  %v898_v33 = vpop.f32.mrf.mxu0  ;;  %v978_v34 = vpop.f32.mrf.mxu1 }
 0x102   : > { %1812 = vst.msk [vmem:[%s2454_s5 + $0x1b0] sm:$0xf] %vm1703_vm3, %v1683_v24  ;;  %v1201_v37 = vmul.f32 %v2430_v39, %v898_v33  ;;  %v1233_v38 = vmul.f32 %v2430_v39, %v978_v34 }
 0x103   : > { %1717 = vst.msk [vmem:[%s2454_s5 + $0x34] sm:$0xf] %vm1703_vm3, %v1588_v25  ;;  %v1396_v41 = vadd.f32 %v2435_v40, %v1264_v31  ;;  %v1428_v42 = vadd.f32 %v2435_v40, %v1296_v32 }
 0x104   : > { %1749 = vst.msk [vmem:[%s2454_s5 + $0xb4] sm:$0xf] %vm1703_vm3, %v1620_v26  ;;  %v1333_v43 = vadd.f32 %v2435_v40, %v1201_v37  ;;  %v1365_v44 = vadd.f32 %v2435_v40, %v1233_v38  ;;  %2171 = vmatmul.msk.bf16.gmra.mxu0 %vm654_vm2, %v2239_v29  ;;  %2187 = vmatmul.msk.bf16.gmra.mxu1 %vm654_vm2, %v2255_v30 }
 0x105   : > { %v1524_v45 = vmax.f32 %v1396_v41, 0.0  ;;  %v1556_v46 = vmax.f32 %v1428_v42, 0.0  ;;  %2203 = vmatmul.msk.bf16.gmra.mxu2 %vm654_vm2, %v2271_v35  ;;  %2219 = vmatmul.msk.bf16.gmra.mxu3 %vm654_vm2, %v2287_v36 }
 0x106   : > { %v1461_v47 = vmax.f32 %v1333_v43, 0.0  ;;  %v1493_v48 = vmax.f32 %v1365_v44, 0.0 }
 0x107   : > { %v1652_v49 = vpack.c.bf16 %v1524_v45, %v1524_v45  ;;  %v1684_v50 = vpack.c.bf16 %v1556_v46, %v1556_v46 }
 0x108   : > { %v1589_v51 = vpack.c.bf16 %v1461_v47, %v1461_v47  ;;  %v1621_v52 = vpack.c.bf16 %v1493_v48, %v1493_v48  ;;  %v1058_v53 = vpop.f32.mrf.mxu2  ;;  %v1138_v54 = vpop.f32.mrf.mxu3 }
 0x109   : > { %1781 = vst.msk [vmem:[%s2454_s5 + $0x134] sm:$0xf] %vm1703_vm3, %v1652_v49  ;;  %v1265_v55 = vmul.f32 %v2430_v39, %v1058_v53  ;;  %v1297_v56 = vmul.f32 %v2430_v39, %v1138_v54  ;;  %v900_v57 = vpop.f32.mrf.mxu0  ;;  %v980_v58 = vpop.f32.mrf.mxu1 }
 0x10a   : > { %1813 = vst.msk [vmem:[%s2454_s5 + $0x1b4] sm:$0xf] %vm1703_vm3, %v1684_v50  ;;  %v1202_v59 = vmul.f32 %v2430_v39, %v900_v57  ;;  %v1234_v60 = vmul.f32 %v2430_v39, %v980_v58 }
 0x10b   : > { %1718 = vst.msk [vmem:[%s2454_s5 + $0x38] sm:$0xf] %vm1703_vm3, %v1589_v51  ;;  %v1397_v61 = vadd.f32 %v2435_v40, %v1265_v55  ;;  %v1429_v62 = vadd.f32 %v2435_v40, %v1297_v56 }
 0x10c   : > { %1750 = vst.msk [vmem:[%s2454_s5 + $0xb8] sm:$0xf] %vm1703_vm3, %v1621_v52  ;;  %v1334_v63 = vadd.f32 %v2435_v40, %v1202_v59  ;;  %v1366_v0 = vadd.f32 %v2435_v40, %v1234_v60 }
 0x10d   : > { %v1525_v1 = vmax.f32 %v1397_v61, 0.0  ;;  %v1557_v2 = vmax.f32 %v1429_v62, 0.0 }
 0x10e   : > { %v1462_v3 = vmax.f32 %v1334_v63, 0.0  ;;  %v1494_v4 = vmax.f32 %v1366_v0, 0.0 }
 0x10f   : > { %v1653_v5 = vpack.c.bf16 %v1525_v1, %v1525_v1  ;;  %v1685_v6 = vpack.c.bf16 %v1557_v2, %v1557_v2 }
 0x110   : > { %v1590_v7 = vpack.c.bf16 %v1462_v3, %v1462_v3  ;;  %v1622_v8 = vpack.c.bf16 %v1494_v4, %v1494_v4  ;;  %v1060_v9 = vpop.f32.mrf.mxu2  ;;  %v1140_v10 = vpop.f32.mrf.mxu3 }
 0x111   : > { %1782 = vst.msk [vmem:[%s2454_s5 + $0x138] sm:$0xf] %vm1703_vm3, %v1653_v5  ;;  %v1266_v11 = vmul.f32 %v2430_v39, %v1060_v9  ;;  %v1298_v12 = vmul.f32 %v2430_v39, %v1140_v10  ;;  %v903_v13 = vpop.f32.mrf.mxu0  ;;  %v983_v14 = vpop.f32.mrf.mxu1 }
 0x112   : > { %1814 = vst.msk [vmem:[%s2454_s5 + $0x1b8] sm:$0xf] %vm1703_vm3, %v1685_v6  ;;  %v1203_v15 = vmul.f32 %v2430_v39, %v903_v13  ;;  %v1235_v16 = vmul.f32 %v2430_v39, %v983_v14 }
 0x113   : > { %1719 = vst.msk [vmem:[%s2454_s5 + $0x3c] sm:$0xf] %vm1703_vm3, %v1590_v7  ;;  %v1398_v17 = vadd.f32 %v2435_v40, %v1266_v11  ;;  %v1430_v18 = vadd.f32 %v2435_v40, %v1298_v12 }
 0x114   : > { %1751 = vst.msk [vmem:[%s2454_s5 + $0xbc] sm:$0xf] %vm1703_vm3, %v1622_v8  ;;  %v1335_v19 = vadd.f32 %v2435_v40, %v1203_v15  ;;  %v1367_v20 = vadd.f32 %v2435_v40, %v1235_v16 }
 0x115   : > { %v1526_v21 = vmax.f32 %v1398_v17, 0.0  ;;  %v1558_v22 = vmax.f32 %v1430_v18, 0.0 }
 0x116   : > { %v1463_v23 = vmax.f32 %v1335_v19, 0.0  ;;  %v1495_v24 = vmax.f32 %v1367_v20, 0.0 }
 0x117   : > { %v1654_v25 = vpack.c.bf16 %v1526_v21, %v1526_v21  ;;  %v1686_v26 = vpack.c.bf16 %v1558_v22, %v1558_v22 }
 0x118   : > { %v1591_v27 = vpack.c.bf16 %v1463_v23, %v1463_v23  ;;  %v1623_v28 = vpack.c.bf16 %v1495_v24, %v1495_v24  ;;  %v1063_v29 = vpop.f32.mrf.mxu2  ;;  %v1143_v30 = vpop.f32.mrf.mxu3 }
 0x119   : > { %1783 = vst.msk [vmem:[%s2454_s5 + $0x13c] sm:$0xf] %vm1703_vm3, %v1654_v25  ;;  %v1267_v31 = vmul.f32 %v2430_v39, %v1063_v29  ;;  %v1299_v32 = vmul.f32 %v2430_v39, %v1143_v30  ;;  %v905_v33 = vpop.f32.mrf.mxu0  ;;  %v985_v34 = vpop.f32.mrf.mxu1 }
 0x11a   : > { %1815 = vst.msk [vmem:[%s2454_s5 + $0x1bc] sm:$0xf] %vm1703_vm3, %v1686_v26  ;;  %v1204_v35 = vmul.f32 %v2430_v39, %v905_v33  ;;  %v1236_v36 = vmul.f32 %v2430_v39, %v985_v34 }
 0x11b   : > { %1720 = vst.msk [vmem:[%s2454_s5 + $0x40] sm:$0xf] %vm1703_vm3, %v1591_v27  ;;  %v1399_v37 = vadd.f32 %v2435_v40, %v1267_v31  ;;  %v1431_v38 = vadd.f32 %v2435_v40, %v1299_v32 }
 0x11c   : > { %1752 = vst.msk [vmem:[%s2454_s5 + $0xc0] sm:$0xf] %vm1703_vm3, %v1623_v28  ;;  %v1336_v41 = vadd.f32 %v2435_v40, %v1204_v35  ;;  %v1368_v42 = vadd.f32 %v2435_v40, %v1236_v36 }
 0x11d   : > { %v1527_v43 = vmax.f32 %v1399_v37, 0.0  ;;  %v1559_v44 = vmax.f32 %v1431_v38, 0.0 }
 0x11e   : > { %v1464_v45 = vmax.f32 %v1336_v41, 0.0  ;;  %v1496_v46 = vmax.f32 %v1368_v42, 0.0 }
 0x11f   : > { %v1655_v47 = vpack.c.bf16 %v1527_v43, %v1527_v43  ;;  %v1687_v48 = vpack.c.bf16 %v1559_v44, %v1559_v44 }
 0x120   : > { %v1592_v49 = vpack.c.bf16 %v1464_v45, %v1464_v45  ;;  %v1624_v50 = vpack.c.bf16 %v1496_v46, %v1496_v46  ;;  %v1065_v51 = vpop.f32.mrf.mxu2  ;;  %v1145_v52 = vpop.f32.mrf.mxu3 }
 0x121   : > { %1784 = vst.msk [vmem:[%s2454_s5 + $0x140] sm:$0xf] %vm1703_vm3, %v1655_v47  ;;  %v1268_v53 = vmul.f32 %v2430_v39, %v1065_v51  ;;  %v1300_v54 = vmul.f32 %v2430_v39, %v1145_v52  ;;  %v908_v55 = vpop.f32.mrf.mxu0  ;;  %v988_v56 = vpop.f32.mrf.mxu1 }
 0x122   : > { %1816 = vst.msk [vmem:[%s2454_s5 + $0x1c0] sm:$0xf] %vm1703_vm3, %v1687_v48  ;;  %v1205_v57 = vmul.f32 %v2430_v39, %v908_v55  ;;  %v1237_v58 = vmul.f32 %v2430_v39, %v988_v56 }
 0x123   : > { %1721 = vst.msk [vmem:[%s2454_s5 + $0x44] sm:$0xf] %vm1703_vm3, %v1592_v49  ;;  %v1400_v59 = vadd.f32 %v2435_v40, %v1268_v53  ;;  %v1432_v60 = vadd.f32 %v2435_v40, %v1300_v54 }
 0x124   : > { %1753 = vst.msk [vmem:[%s2454_s5 + $0xc4] sm:$0xf] %vm1703_vm3, %v1624_v50  ;;  %v1337_v61 = vadd.f32 %v2435_v40, %v1205_v57  ;;  %v1369_v62 = vadd.f32 %v2435_v40, %v1237_v58  ;;  %v2802_v40 = vld [vmem:[%s3035_s2] ss:$0 sm:$0xff] }
 0x125   : > { %v1528_v63 = vmax.f32 %v1400_v59, 0.0  ;;  %v1560_v0 = vmax.f32 %v1432_v60, 0.0 }
 0x126   : > { %v1465_v1 = vmax.f32 %v1337_v61, 0.0  ;;  %v1497_v2 = vmax.f32 %v1369_v62, 0.0 }
 0x127   : > { %v1656_v3 = vpack.c.bf16 %v1528_v63, %v1528_v63  ;;  %v1688_v4 = vpack.c.bf16 %v1560_v0, %v1560_v0 }
 0x128   : > { %v1593_v5 = vpack.c.bf16 %v1465_v1, %v1465_v1  ;;  %v1625_v6 = vpack.c.bf16 %v1497_v2, %v1497_v2  ;;  %v1068_v7 = vpop.f32.mrf.mxu2  ;;  %v1148_v8 = vpop.f32.mrf.mxu3 }
 0x129   : > { %1785 = vst.msk [vmem:[%s2454_s5 + $0x144] sm:$0xf] %vm1703_vm3, %v1656_v3  ;;  %v1269_v9 = vmul.f32 %v2430_v39, %v1068_v7  ;;  %v1301_v10 = vmul.f32 %v2802_v40, %v1148_v8  ;;  %v910_v11 = vpop.f32.mrf.mxu0  ;;  %v990_v12 = vpop.f32.mrf.mxu1  ;;  %v2814_v39 = vld [vmem:[%s3036_s3] ss:$0 sm:$0xff] }
 0x12a   : > { %1817 = vst.msk [vmem:[%s2454_s5 + $0x1c4] sm:$0xf] %vm1703_vm3, %v1688_v4  ;;  %v1206_v13 = vmul.f32 %v2802_v40, %v910_v11  ;;  %v1238_v14 = vmul.f32 %v2802_v40, %v990_v12 }
 0x12b   : > { %1722 = vst.msk [vmem:[%s2454_s5 + $0x48] sm:$0xf] %vm1703_vm3, %v1593_v5  ;;  %v1401_v15 = vadd.f32 %v2814_v39, %v1269_v9  ;;  %v1433_v16 = vadd.f32 %v2814_v39, %v1301_v10 }
 0x12c   : > { %1754 = vst.msk [vmem:[%s2454_s5 + $0xc8] sm:$0xf] %vm1703_vm3, %v1625_v6  ;;  %v1338_v17 = vadd.f32 %v2814_v39, %v1206_v13  ;;  %v1370_v18 = vadd.f32 %v2814_v39, %v1238_v14 }
 0x12d   : > { %v1529_v19 = vmax.f32 %v1401_v15, 0.0  ;;  %v1561_v20 = vmax.f32 %v1433_v16, 0.0 }
 0x12e   : > { %v1466_v21 = vmax.f32 %v1338_v17, 0.0  ;;  %v1498_v22 = vmax.f32 %v1370_v18, 0.0 }
 0x12f   : > { %v1657_v23 = vpack.c.bf16 %v1529_v19, %v1529_v19  ;;  %v1689_v24 = vpack.c.bf16 %v1561_v20, %v1561_v20 }
 0x130   : > { %v1594_v25 = vpack.c.bf16 %v1466_v21, %v1466_v21  ;;  %v1626_v26 = vpack.c.bf16 %v1498_v22, %v1498_v22  ;;  %v1070_v27 = vpop.f32.mrf.mxu2  ;;  %v1150_v28 = vpop.f32.mrf.mxu3 }
 0x131   : > { %1786 = vst.msk [vmem:[%s2454_s5 + $0x148] sm:$0xf] %vm1703_vm3, %v1657_v23  ;;  %v1270_v29 = vmul.f32 %v2802_v40, %v1070_v27  ;;  %v1302_v30 = vmul.f32 %v2802_v40, %v1150_v28  ;;  %v913_v31 = vpop.f32.mrf.mxu0  ;;  %v993_v32 = vpop.f32.mrf.mxu1 }
 0x132   : > { %1818 = vst.msk [vmem:[%s2454_s5 + $0x1c8] sm:$0xf] %vm1703_vm3, %v1689_v24  ;;  %v1207_v33 = vmul.f32 %v2802_v40, %v913_v31  ;;  %v1239_v34 = vmul.f32 %v2802_v40, %v993_v32 }
 0x133   : > { %1723 = vst.msk [vmem:[%s2454_s5 + $0x4c] sm:$0xf] %vm1703_vm3, %v1594_v25  ;;  %v1402_v35 = vadd.f32 %v2814_v39, %v1270_v29  ;;  %v1434_v36 = vadd.f32 %v2814_v39, %v1302_v30 }
 0x134   : > { %1755 = vst.msk [vmem:[%s2454_s5 + $0xcc] sm:$0xf] %vm1703_vm3, %v1626_v26  ;;  %v1339_v37 = vadd.f32 %v2814_v39, %v1207_v33  ;;  %v1371_v38 = vadd.f32 %v2814_v39, %v1239_v34 }
 0x135   : > { %v1530_v41 = vmax.f32 %v1402_v35, 0.0  ;;  %v1562_v42 = vmax.f32 %v1434_v36, 0.0 }
 0x136   : > { %v1467_v43 = vmax.f32 %v1339_v37, 0.0  ;;  %v1499_v44 = vmax.f32 %v1371_v38, 0.0 }
 0x137   : > { %v1658_v45 = vpack.c.bf16 %v1530_v41, %v1530_v41  ;;  %v1690_v46 = vpack.c.bf16 %v1562_v42, %v1562_v42 }
 0x138   : > { %v1595_v47 = vpack.c.bf16 %v1467_v43, %v1467_v43  ;;  %v1627_v48 = vpack.c.bf16 %v1499_v44, %v1499_v44  ;;  %v1073_v49 = vpop.f32.mrf.mxu2  ;;  %v1153_v50 = vpop.f32.mrf.mxu3 }
 0x139   : > { %1787 = vst.msk [vmem:[%s2454_s5 + $0x14c] sm:$0xf] %vm1703_vm3, %v1658_v45  ;;  %v1271_v51 = vmul.f32 %v2802_v40, %v1073_v49  ;;  %v1303_v52 = vmul.f32 %v2802_v40, %v1153_v50  ;;  %v915_v53 = vpop.f32.mrf.mxu0  ;;  %v995_v54 = vpop.f32.mrf.mxu1 }
 0x13a   : > { %1819 = vst.msk [vmem:[%s2454_s5 + $0x1cc] sm:$0xf] %vm1703_vm3, %v1690_v46  ;;  %v1208_v55 = vmul.f32 %v2802_v40, %v915_v53  ;;  %v1240_v56 = vmul.f32 %v2802_v40, %v995_v54 }
 0x13b   : > { %1724 = vst.msk [vmem:[%s2454_s5 + $0x50] sm:$0xf] %vm1703_vm3, %v1595_v47  ;;  %v1403_v57 = vadd.f32 %v2814_v39, %v1271_v51  ;;  %v1435_v58 = vadd.f32 %v2814_v39, %v1303_v52 }
 0x13c   : > { %1756 = vst.msk [vmem:[%s2454_s5 + $0xd0] sm:$0xf] %vm1703_vm3, %v1627_v48  ;;  %v1340_v59 = vadd.f32 %v2814_v39, %v1208_v55  ;;  %v1372_v60 = vadd.f32 %v2814_v39, %v1240_v56 }
 0x13d   : > { %v1531_v61 = vmax.f32 %v1403_v57, 0.0  ;;  %v1563_v62 = vmax.f32 %v1435_v58, 0.0 }
 0x13e   : > { %v1468_v63 = vmax.f32 %v1340_v59, 0.0  ;;  %v1500_v0 = vmax.f32 %v1372_v60, 0.0 }
 0x13f   : > { %v1659_v1 = vpack.c.bf16 %v1531_v61, %v1531_v61  ;;  %v1691_v2 = vpack.c.bf16 %v1563_v62, %v1563_v62 }
 0x140   : > { %v1596_v3 = vpack.c.bf16 %v1468_v63, %v1468_v63  ;;  %v1628_v4 = vpack.c.bf16 %v1500_v0, %v1500_v0  ;;  %v1075_v5 = vpop.f32.mrf.mxu2  ;;  %v1155_v6 = vpop.f32.mrf.mxu3 }
 0x141   : > { %1788 = vst.msk [vmem:[%s2454_s5 + $0x150] sm:$0xf] %vm1703_vm3, %v1659_v1  ;;  %v1272_v7 = vmul.f32 %v2802_v40, %v1075_v5  ;;  %v1304_v8 = vmul.f32 %v2802_v40, %v1155_v6  ;;  %v918_v9 = vpop.f32.mrf.mxu0  ;;  %v998_v10 = vpop.f32.mrf.mxu1 }
 0x142   : > { %1820 = vst.msk [vmem:[%s2454_s5 + $0x1d0] sm:$0xf] %vm1703_vm3, %v1691_v2  ;;  %v1209_v11 = vmul.f32 %v2802_v40, %v918_v9  ;;  %v1241_v12 = vmul.f32 %v2802_v40, %v998_v10 }
 0x143   : > { %1725 = vst.msk [vmem:[%s2454_s5 + $0x54] sm:$0xf] %vm1703_vm3, %v1596_v3  ;;  %v1404_v13 = vadd.f32 %v2814_v39, %v1272_v7  ;;  %v1436_v14 = vadd.f32 %v2814_v39, %v1304_v8 }
 0x144   : > { %1757 = vst.msk [vmem:[%s2454_s5 + $0xd4] sm:$0xf] %vm1703_vm3, %v1628_v4  ;;  %v1341_v15 = vadd.f32 %v2814_v39, %v1209_v11  ;;  %v1373_v16 = vadd.f32 %v2814_v39, %v1241_v12 }
 0x145   : > { %v1532_v17 = vmax.f32 %v1404_v13, 0.0  ;;  %v1564_v18 = vmax.f32 %v1436_v14, 0.0 }
 0x146   : > { %v1469_v19 = vmax.f32 %v1341_v15, 0.0  ;;  %v1501_v20 = vmax.f32 %v1373_v16, 0.0 }
 0x147   : > { %v1660_v21 = vpack.c.bf16 %v1532_v17, %v1532_v17  ;;  %v1692_v22 = vpack.c.bf16 %v1564_v18, %v1564_v18 }
 0x148   : > { %v1597_v23 = vpack.c.bf16 %v1469_v19, %v1469_v19  ;;  %v1629_v24 = vpack.c.bf16 %v1501_v20, %v1501_v20  ;;  %v1078_v25 = vpop.f32.mrf.mxu2  ;;  %v1158_v26 = vpop.f32.mrf.mxu3 }
 0x149   : > { %1789 = vst.msk [vmem:[%s2454_s5 + $0x154] sm:$0xf] %vm1703_vm3, %v1660_v21  ;;  %v1273_v27 = vmul.f32 %v2802_v40, %v1078_v25  ;;  %v1305_v28 = vmul.f32 %v2802_v40, %v1158_v26  ;;  %v920_v29 = vpop.f32.mrf.mxu0  ;;  %v1000_v30 = vpop.f32.mrf.mxu1 }
 0x14a   : > { %1821 = vst.msk [vmem:[%s2454_s5 + $0x1d4] sm:$0xf] %vm1703_vm3, %v1692_v22  ;;  %v1210_v31 = vmul.f32 %v2802_v40, %v920_v29  ;;  %v1242_v32 = vmul.f32 %v2802_v40, %v1000_v30 }
 0x14b   : > { %1726 = vst.msk [vmem:[%s2454_s5 + $0x58] sm:$0xf] %vm1703_vm3, %v1597_v23  ;;  %v1405_v33 = vadd.f32 %v2814_v39, %v1273_v27  ;;  %v1437_v34 = vadd.f32 %v2814_v39, %v1305_v28 }
 0x14c   : > { %1758 = vst.msk [vmem:[%s2454_s5 + $0xd8] sm:$0xf] %vm1703_vm3, %v1629_v24  ;;  %v1342_v35 = vadd.f32 %v2814_v39, %v1210_v31  ;;  %v1374_v36 = vadd.f32 %v2814_v39, %v1242_v32 }
 0x14d   : > { %v1533_v37 = vmax.f32 %v1405_v33, 0.0  ;;  %v1565_v38 = vmax.f32 %v1437_v34, 0.0 }
 0x14e   : > { %v1470_v41 = vmax.f32 %v1342_v35, 0.0  ;;  %v1502_v42 = vmax.f32 %v1374_v36, 0.0 }
 0x14f   : > { %v1661_v43 = vpack.c.bf16 %v1533_v37, %v1533_v37  ;;  %v1693_v44 = vpack.c.bf16 %v1565_v38, %v1565_v38 }
 0x150   : > { %v1598_v45 = vpack.c.bf16 %v1470_v41, %v1470_v41  ;;  %v1630_v46 = vpack.c.bf16 %v1502_v42, %v1502_v42  ;;  %v1080_v47 = vpop.f32.mrf.mxu2  ;;  %v1160_v48 = vpop.f32.mrf.mxu3 }
 0x151   : > { %1790 = vst.msk [vmem:[%s2454_s5 + $0x158] sm:$0xf] %vm1703_vm3, %v1661_v43  ;;  %v1274_v49 = vmul.f32 %v2802_v40, %v1080_v47  ;;  %v1306_v50 = vmul.f32 %v2802_v40, %v1160_v48  ;;  %v923_v51 = vpop.f32.mrf.mxu0  ;;  %v1003_v52 = vpop.f32.mrf.mxu1 }
 0x152   : > { %1822 = vst.msk [vmem:[%s2454_s5 + $0x1d8] sm:$0xf] %vm1703_vm3, %v1693_v44  ;;  %v1211_v53 = vmul.f32 %v2802_v40, %v923_v51  ;;  %v1243_v54 = vmul.f32 %v2802_v40, %v1003_v52 }
 0x153   : > { %1727 = vst.msk [vmem:[%s2454_s5 + $0x5c] sm:$0xf] %vm1703_vm3, %v1598_v45  ;;  %v1406_v55 = vadd.f32 %v2814_v39, %v1274_v49  ;;  %v1438_v56 = vadd.f32 %v2814_v39, %v1306_v50 }
 0x154   : > { %1759 = vst.msk [vmem:[%s2454_s5 + $0xdc] sm:$0xf] %vm1703_vm3, %v1630_v46  ;;  %v1343_v57 = vadd.f32 %v2814_v39, %v1211_v53  ;;  %v1375_v58 = vadd.f32 %v2814_v39, %v1243_v54 }
 0x155   : > { %v1534_v59 = vmax.f32 %v1406_v55, 0.0  ;;  %v1566_v60 = vmax.f32 %v1438_v56, 0.0 }
 0x156   : > { %v1471_v61 = vmax.f32 %v1343_v57, 0.0  ;;  %v1503_v62 = vmax.f32 %v1375_v58, 0.0 }
 0x157   : > { %v1662_v63 = vpack.c.bf16 %v1534_v59, %v1534_v59  ;;  %v1694_v0 = vpack.c.bf16 %v1566_v60, %v1566_v60 }
 0x158   : > { %v1599_v1 = vpack.c.bf16 %v1471_v61, %v1471_v61  ;;  %v1631_v2 = vpack.c.bf16 %v1503_v62, %v1503_v62  ;;  %v1083_v3 = vpop.f32.mrf.mxu2  ;;  %v1163_v4 = vpop.f32.mrf.mxu3 }
 0x159   : > { %1791 = vst.msk [vmem:[%s2454_s5 + $0x15c] sm:$0xf] %vm1703_vm3, %v1662_v63  ;;  %v1275_v5 = vmul.f32 %v2802_v40, %v1083_v3  ;;  %v1307_v6 = vmul.f32 %v2802_v40, %v1163_v4  ;;  %v925_v7 = vpop.f32.mrf.mxu0  ;;  %v1005_v8 = vpop.f32.mrf.mxu1 }
 0x15a   : > { %1823 = vst.msk [vmem:[%s2454_s5 + $0x1dc] sm:$0xf] %vm1703_vm3, %v1694_v0  ;;  %v1212_v9 = vmul.f32 %v2802_v40, %v925_v7  ;;  %v1244_v10 = vmul.f32 %v2802_v40, %v1005_v8 }
 0x15b   : > { %1728 = vst.msk [vmem:[%s2454_s5 + $0x60] sm:$0xf] %vm1703_vm3, %v1599_v1  ;;  %v1407_v11 = vadd.f32 %v2814_v39, %v1275_v5  ;;  %v1439_v12 = vadd.f32 %v2814_v39, %v1307_v6 }
 0x15c   : > { %1760 = vst.msk [vmem:[%s2454_s5 + $0xe0] sm:$0xf] %vm1703_vm3, %v1631_v2  ;;  %v1344_v13 = vadd.f32 %v2814_v39, %v1212_v9  ;;  %v1376_v14 = vadd.f32 %v2814_v39, %v1244_v10 }
 0x15d   : > { %v1535_v15 = vmax.f32 %v1407_v11, 0.0  ;;  %v1567_v16 = vmax.f32 %v1439_v12, 0.0 }
 0x15e   : > { %v1472_v17 = vmax.f32 %v1344_v13, 0.0  ;;  %v1504_v18 = vmax.f32 %v1376_v14, 0.0 }
 0x15f   : > { %v1663_v19 = vpack.c.bf16 %v1535_v15, %v1535_v15  ;;  %v1695_v20 = vpack.c.bf16 %v1567_v16, %v1567_v16 }
 0x160   : > { %v1600_v21 = vpack.c.bf16 %v1472_v17, %v1472_v17  ;;  %v1632_v22 = vpack.c.bf16 %v1504_v18, %v1504_v18  ;;  %v1085_v23 = vpop.f32.mrf.mxu2  ;;  %v1165_v24 = vpop.f32.mrf.mxu3 }
 0x161   : > { %1792 = vst.msk [vmem:[%s2454_s5 + $0x160] sm:$0xf] %vm1703_vm3, %v1663_v19  ;;  %v1276_v25 = vmul.f32 %v2802_v40, %v1085_v23  ;;  %v1308_v26 = vmul.f32 %v2802_v40, %v1165_v24  ;;  %v928_v27 = vpop.f32.mrf.mxu0  ;;  %v1008_v28 = vpop.f32.mrf.mxu1 }
 0x162   : > { %1824 = vst.msk [vmem:[%s2454_s5 + $0x1e0] sm:$0xf] %vm1703_vm3, %v1695_v20  ;;  %v1213_v29 = vmul.f32 %v2802_v40, %v928_v27  ;;  %v1245_v30 = vmul.f32 %v2802_v40, %v1008_v28 }
 0x163   : > { %1729 = vst.msk [vmem:[%s2454_s5 + $0x64] sm:$0xf] %vm1703_vm3, %v1600_v21  ;;  %v1408_v31 = vadd.f32 %v2814_v39, %v1276_v25  ;;  %v1440_v32 = vadd.f32 %v2814_v39, %v1308_v26 }
 0x164   : > { %1761 = vst.msk [vmem:[%s2454_s5 + $0xe4] sm:$0xf] %vm1703_vm3, %v1632_v22  ;;  %v1345_v33 = vadd.f32 %v2814_v39, %v1213_v29  ;;  %v1377_v34 = vadd.f32 %v2814_v39, %v1245_v30 }
 0x165   : > { %v1536_v35 = vmax.f32 %v1408_v31, 0.0  ;;  %v1568_v36 = vmax.f32 %v1440_v32, 0.0 }
 0x166   : > { %v1473_v37 = vmax.f32 %v1345_v33, 0.0  ;;  %v1505_v38 = vmax.f32 %v1377_v34, 0.0 }
 0x167   : > { %v1664_v41 = vpack.c.bf16 %v1536_v35, %v1536_v35  ;;  %v1696_v42 = vpack.c.bf16 %v1568_v36, %v1568_v36 }
 0x168   : > { %v1601_v43 = vpack.c.bf16 %v1473_v37, %v1473_v37  ;;  %v1633_v44 = vpack.c.bf16 %v1505_v38, %v1505_v38  ;;  %v1088_v45 = vpop.f32.mrf.mxu2  ;;  %v1168_v46 = vpop.f32.mrf.mxu3 }
 0x169   : > { %1793 = vst.msk [vmem:[%s2454_s5 + $0x164] sm:$0xf] %vm1703_vm3, %v1664_v41  ;;  %v1277_v47 = vmul.f32 %v2802_v40, %v1088_v45  ;;  %v1309_v48 = vmul.f32 %v2802_v40, %v1168_v46  ;;  %v930_v49 = vpop.f32.mrf.mxu0  ;;  %v1010_v50 = vpop.f32.mrf.mxu1 }
 0x16a   : > { %1825 = vst.msk [vmem:[%s2454_s5 + $0x1e4] sm:$0xf] %vm1703_vm3, %v1696_v42  ;;  %v1214_v51 = vmul.f32 %v2802_v40, %v930_v49  ;;  %v1246_v52 = vmul.f32 %v2802_v40, %v1010_v50 }
 0x16b   : > { %1730 = vst.msk [vmem:[%s2454_s5 + $0x68] sm:$0xf] %vm1703_vm3, %v1601_v43  ;;  %v1409_v53 = vadd.f32 %v2814_v39, %v1277_v47  ;;  %v1441_v54 = vadd.f32 %v2814_v39, %v1309_v48 }
 0x16c   : > { %1762 = vst.msk [vmem:[%s2454_s5 + $0xe8] sm:$0xf] %vm1703_vm3, %v1633_v44  ;;  %v1346_v55 = vadd.f32 %v2814_v39, %v1214_v51  ;;  %v1378_v56 = vadd.f32 %v2814_v39, %v1246_v52 }
 0x16d   : > { %v1537_v57 = vmax.f32 %v1409_v53, 0.0  ;;  %v1569_v58 = vmax.f32 %v1441_v54, 0.0 }
 0x16e   : > { %v1474_v59 = vmax.f32 %v1346_v55, 0.0  ;;  %v1506_v60 = vmax.f32 %v1378_v56, 0.0 }
 0x16f   : > { %v1665_v61 = vpack.c.bf16 %v1537_v57, %v1537_v57  ;;  %v1697_v62 = vpack.c.bf16 %v1569_v58, %v1569_v58 }
 0x170   : > { %v1602_v63 = vpack.c.bf16 %v1474_v59, %v1474_v59  ;;  %v1634_v0 = vpack.c.bf16 %v1506_v60, %v1506_v60  ;;  %v1090_v1 = vpop.f32.mrf.mxu2  ;;  %v1170_v2 = vpop.f32.mrf.mxu3 }
 0x171   : > { %1794 = vst.msk [vmem:[%s2454_s5 + $0x168] sm:$0xf] %vm1703_vm3, %v1665_v61  ;;  %v1278_v3 = vmul.f32 %v2802_v40, %v1090_v1  ;;  %v1310_v4 = vmul.f32 %v2802_v40, %v1170_v2  ;;  %v933_v5 = vpop.f32.mrf.mxu0  ;;  %v1013_v6 = vpop.f32.mrf.mxu1 }
 0x172   : > { %1826 = vst.msk [vmem:[%s2454_s5 + $0x1e8] sm:$0xf] %vm1703_vm3, %v1697_v62  ;;  %v1215_v7 = vmul.f32 %v2802_v40, %v933_v5  ;;  %v1247_v8 = vmul.f32 %v2802_v40, %v1013_v6 }
 0x173   : > { %1731 = vst.msk [vmem:[%s2454_s5 + $0x6c] sm:$0xf] %vm1703_vm3, %v1602_v63  ;;  %v1410_v9 = vadd.f32 %v2814_v39, %v1278_v3  ;;  %v1442_v10 = vadd.f32 %v2814_v39, %v1310_v4 }
 0x174   : > { %1763 = vst.msk [vmem:[%s2454_s5 + $0xec] sm:$0xf] %vm1703_vm3, %v1634_v0  ;;  %v1347_v11 = vadd.f32 %v2814_v39, %v1215_v7  ;;  %v1379_v12 = vadd.f32 %v2814_v39, %v1247_v8 }
 0x175   : > { %v1538_v13 = vmax.f32 %v1410_v9, 0.0  ;;  %v1570_v14 = vmax.f32 %v1442_v10, 0.0 }
 0x176   : > { %v1475_v15 = vmax.f32 %v1347_v11, 0.0  ;;  %v1507_v16 = vmax.f32 %v1379_v12, 0.0 }
 0x177   : > { %v1666_v17 = vpack.c.bf16 %v1538_v13, %v1538_v13  ;;  %v1698_v18 = vpack.c.bf16 %v1570_v14, %v1570_v14 }
 0x178   : > { %v1603_v19 = vpack.c.bf16 %v1475_v15, %v1475_v15  ;;  %v1635_v20 = vpack.c.bf16 %v1507_v16, %v1507_v16  ;;  %v1093_v21 = vpop.f32.mrf.mxu2  ;;  %v1173_v22 = vpop.f32.mrf.mxu3 }
 0x179   : > { %1795 = vst.msk [vmem:[%s2454_s5 + $0x16c] sm:$0xf] %vm1703_vm3, %v1666_v17  ;;  %v1279_v23 = vmul.f32 %v2802_v40, %v1093_v21  ;;  %v1311_v24 = vmul.f32 %v2802_v40, %v1173_v22  ;;  %v935_v25 = vpop.f32.mrf.mxu0  ;;  %v1015_v26 = vpop.f32.mrf.mxu1 }
 0x17a   : > { %1827 = vst.msk [vmem:[%s2454_s5 + $0x1ec] sm:$0xf] %vm1703_vm3, %v1698_v18  ;;  %v1216_v27 = vmul.f32 %v2802_v40, %v935_v25  ;;  %v1248_v28 = vmul.f32 %v2802_v40, %v1015_v26 }
 0x17b   : > { %1732 = vst.msk [vmem:[%s2454_s5 + $0x70] sm:$0xf] %vm1703_vm3, %v1603_v19  ;;  %v1411_v29 = vadd.f32 %v2814_v39, %v1279_v23  ;;  %v1443_v30 = vadd.f32 %v2814_v39, %v1311_v24 }
 0x17c   : > { %1764 = vst.msk [vmem:[%s2454_s5 + $0xf0] sm:$0xf] %vm1703_vm3, %v1635_v20  ;;  %v1348_v31 = vadd.f32 %v2814_v39, %v1216_v27  ;;  %v1380_v32 = vadd.f32 %v2814_v39, %v1248_v28 }
 0x17d   : > { %v1539_v33 = vmax.f32 %v1411_v29, 0.0  ;;  %v1571_v34 = vmax.f32 %v1443_v30, 0.0 }
 0x17e   : > { %v1476_v35 = vmax.f32 %v1348_v31, 0.0  ;;  %v1508_v36 = vmax.f32 %v1380_v32, 0.0 }
 0x17f   : > { %v1667_v37 = vpack.c.bf16 %v1539_v33, %v1539_v33  ;;  %v1699_v38 = vpack.c.bf16 %v1571_v34, %v1571_v34 }
 0x180   : > { %v1604_v41 = vpack.c.bf16 %v1476_v35, %v1476_v35  ;;  %v1636_v42 = vpack.c.bf16 %v1508_v36, %v1508_v36  ;;  %v1095_v43 = vpop.f32.mrf.mxu2  ;;  %v1175_v44 = vpop.f32.mrf.mxu3 }
 0x181   : > { %1796 = vst.msk [vmem:[%s2454_s5 + $0x170] sm:$0xf] %vm1703_vm3, %v1667_v37  ;;  %v1280_v45 = vmul.f32 %v2802_v40, %v1095_v43  ;;  %v1312_v46 = vmul.f32 %v2802_v40, %v1175_v44  ;;  %v938_v47 = vpop.f32.mrf.mxu0  ;;  %v1018_v48 = vpop.f32.mrf.mxu1 }
 0x182   : > { %1828 = vst.msk [vmem:[%s2454_s5 + $0x1f0] sm:$0xf] %vm1703_vm3, %v1699_v38  ;;  %v1217_v49 = vmul.f32 %v2802_v40, %v938_v47  ;;  %v1249_v50 = vmul.f32 %v2802_v40, %v1018_v48 }
 0x183   : > { %1733 = vst.msk [vmem:[%s2454_s5 + $0x74] sm:$0xf] %vm1703_vm3, %v1604_v41  ;;  %v1412_v51 = vadd.f32 %v2814_v39, %v1280_v45  ;;  %v1444_v52 = vadd.f32 %v2814_v39, %v1312_v46 }
 0x184   : > { %1765 = vst.msk [vmem:[%s2454_s5 + $0xf4] sm:$0xf] %vm1703_vm3, %v1636_v42  ;;  %v1349_v53 = vadd.f32 %v2814_v39, %v1217_v49  ;;  %v1381_v54 = vadd.f32 %v2814_v39, %v1249_v50 }
 0x185   : > { %v1540_v55 = vmax.f32 %v1412_v51, 0.0  ;;  %v1572_v56 = vmax.f32 %v1444_v52, 0.0 }
 0x186   : > { %v1477_v57 = vmax.f32 %v1349_v53, 0.0  ;;  %v1509_v58 = vmax.f32 %v1381_v54, 0.0 }
 0x187   : > { %v1668_v59 = vpack.c.bf16 %v1540_v55, %v1540_v55  ;;  %v1700_v60 = vpack.c.bf16 %v1572_v56, %v1572_v56 }
 0x188   : > { %v1605_v61 = vpack.c.bf16 %v1477_v57, %v1477_v57  ;;  %v1637_v62 = vpack.c.bf16 %v1509_v58, %v1509_v58  ;;  %v1098_v63 = vpop.f32.mrf.mxu2  ;;  %v1178_v0 = vpop.f32.mrf.mxu3 }
 0x189   : > { %1797 = vst.msk [vmem:[%s2454_s5 + $0x174] sm:$0xf] %vm1703_vm3, %v1668_v59  ;;  %v1281_v1 = vmul.f32 %v2802_v40, %v1098_v63  ;;  %v1313_v2 = vmul.f32 %v2802_v40, %v1178_v0  ;;  %v940_v3 = vpop.f32.mrf.mxu0  ;;  %v1020_v4 = vpop.f32.mrf.mxu1 }
 0x18a   : > { %1829 = vst.msk [vmem:[%s2454_s5 + $0x1f4] sm:$0xf] %vm1703_vm3, %v1700_v60  ;;  %v1218_v5 = vmul.f32 %v2802_v40, %v940_v3  ;;  %v1250_v6 = vmul.f32 %v2802_v40, %v1020_v4 }
 0x18b   : > { %1734 = vst.msk [vmem:[%s2454_s5 + $0x78] sm:$0xf] %vm1703_vm3, %v1605_v61  ;;  %v1413_v7 = vadd.f32 %v2814_v39, %v1281_v1  ;;  %v1445_v8 = vadd.f32 %v2814_v39, %v1313_v2 }
 0x18c   : > { %1766 = vst.msk [vmem:[%s2454_s5 + $0xf8] sm:$0xf] %vm1703_vm3, %v1637_v62  ;;  %v1350_v9 = vadd.f32 %v2814_v39, %v1218_v5  ;;  %v1382_v10 = vadd.f32 %v2814_v39, %v1250_v6 }
 0x18d   : > { %v1541_v11 = vmax.f32 %v1413_v7, 0.0  ;;  %v1573_v12 = vmax.f32 %v1445_v8, 0.0 }
 0x18e   : > { %v1478_v13 = vmax.f32 %v1350_v9, 0.0  ;;  %v1510_v14 = vmax.f32 %v1382_v10, 0.0 }
 0x18f   : > { %v1669_v15 = vpack.c.bf16 %v1541_v11, %v1541_v11  ;;  %v1701_v16 = vpack.c.bf16 %v1573_v12, %v1573_v12 }
 0x190   : > { %v1606_v17 = vpack.c.bf16 %v1478_v13, %v1478_v13  ;;  %v1638_v18 = vpack.c.bf16 %v1510_v14, %v1510_v14  ;;  %v1100_v19 = vpop.f32.mrf.mxu2  ;;  %v1180_v20 = vpop.f32.mrf.mxu3 }
 0x191   : > { %1798 = vst.msk [vmem:[%s2454_s5 + $0x178] sm:$0xf] %vm1703_vm3, %v1669_v15  ;;  %v1282_v21 = vmul.f32 %v2802_v40, %v1100_v19  ;;  %v1314_v22 = vmul.f32 %v2802_v40, %v1180_v20 }
 0x192   : > { %1830 = vst.msk [vmem:[%s2454_s5 + $0x1f8] sm:$0xf] %vm1703_vm3, %v1701_v16 }
 0x193   : > { %1735 = vst.msk [vmem:[%s2454_s5 + $0x7c] sm:$0xf] %vm1703_vm3, %v1606_v17  ;;  %v1414_v23 = vadd.f32 %v2814_v39, %v1282_v21  ;;  %v1446_v24 = vadd.f32 %v2814_v39, %v1314_v22 }
 0x194   : > { %1767 = vst.msk [vmem:[%s2454_s5 + $0xfc] sm:$0xf] %vm1703_vm3, %v1638_v18 }
 0x195   : > { %v1542_v25 = vmax.f32 %v1414_v23, 0.0  ;;  %v1574_v26 = vmax.f32 %v1446_v24, 0.0 }
 0x197   : > { %v1670_v27 = vpack.c.bf16 %v1542_v25, %v1542_v25  ;;  %v1702_v28 = vpack.c.bf16 %v1574_v26, %v1574_v26 }
 0x199   : > { %1799 = vst.msk [vmem:[%s2454_s5 + $0x17c] sm:$0xf] %vm1703_vm3, %v1670_v27 }
 0x19a   : > { %1831 = vst.msk [vmem:[%s2454_s5 + $0x1fc] sm:$0xf] %vm1703_vm3, %v1702_v28 }
 0x19b PF: > { %s14_s15 = sadd.s32 1, %s2311_s15  }
 0x19c   : > { %p11_p4 = scmp.ge.s32.totalorder %s14_s15, 4  }
 0x19e   :  { %13 = sbr.rel (!%p11_p4) target bundleno = 1 (0x1), region = 66 }

</bundles_post_ra>
